<compile_context>
chip_gen: v6e
topology: v6e:2x2x1
jax: 0.10.0
libtpu: 0.0.40
codegen_flags: <defaults>
</compile_context>

<pallas_src>
import functools

import jax
import jax.numpy as jnp
import numpy as np
from jax.experimental import pallas as pl
from jax.experimental.pallas import tpu as pltpu

SUB = 5    # sub-RNN batch rows (fixed by init_hidden(5) in the module)
SUBP = 8   # SUB padded to a full 8-sublane vreg
V = 5      # vector_size (fixed by the module)


def proofreader_kernel(x_ref,                          # (B*L*SUBP, V) f32
                       wih_s_ref, whh_s_ref, b_s_ref,  # sub_rnn: (V,HD),(HD,HD),(1,HD)
                       wih_ref, whh_ref, b_ref,        # rnn:     (HD,HD),(HD,HD),(1,HD)
                       wfc_ref, bfc_ref,               # fc:      (HD,OUT),(1,OUT)
                       out_ref,                        # (B, OUT) f32
                       *, batch, seq_len, sub):
    B, OUT = out_ref.shape
    HD = whh_s_ref.shape[0]
    L = seq_len

    # ---- (1) sub-RNN input projection, hoisted out of the recurrence -------
    # One (B*L*SUBP, V) @ (V, HD) matmul + ONE bias broadcast; kept as a value
    # in vregs (no VMEM scratch round-trip; every per-step slice below is a
    # static, 8-row-aligned vreg select).
    xproj = (jnp.dot(x_ref[...], wih_s_ref[...],
                     preferred_element_type=jnp.float32)
             + b_s_ref[...])                                   # (B*L*SUBP, HD)

    # Hoisted weight loads; recurrent RHS cast to bf16 ONCE (single-pass MXU
    # per serial step instead of ~3 passes for f32xf32).
    whh_s_bf = whh_s_ref[...].astype(jnp.bfloat16)             # (HD, HD)
    whh_m_bf = whh_ref[...].astype(jnp.bfloat16)               # (HD, HD)
    wih_m = wih_ref[...]                                       # (HD, HD)
    b_m = b_ref[...]                                           # (1, HD)

    # ---- (2) sub-RNN recurrence ---------------------------------------------
    # IMPORTANT: like the PyTorch code, h_sub is carried ACROSS batch elements.
    # Rows >= SUB are zero-padding; they evolve as garbage and are ignored.
    h_sub = jnp.zeros((SUBP, HD), dtype=jnp.float32)
    xz_rows = []                                               # per-b (SUBP, HD)
    for b in range(batch):
        for t in range(L):
            r0 = (b * L + t) * SUBP                            # multiple of 8
            h_sub = jnp.tanh(
                xproj[r0:r0 + SUBP, :]
                + jnp.dot(h_sub.astype(jnp.bfloat16), whh_s_bf,
                          preferred_element_type=jnp.float32))
        # ---- (3) main-RNN input projection, per batch element ---------------
        # Done immediately so it can be scheduled into MXU bubbles during the
        # next batch element's serial recurrence (no full concat barrier).
        xz_rows.append(jnp.dot(h_sub, wih_m,
                               preferred_element_type=jnp.float32) + b_m)

    # One-time re-layout: per-time-step contiguous (B, HD) inputs via static
    # slices, so the serial main-RNN loop does no strided middle-axis slicing.
    x_steps = [
        jnp.concatenate([xz_rows[b][t:t + 1, :] for b in range(batch)], axis=0)
        for t in range(sub)
    ]

    # ---- (4) main RNN over the `sub` real time steps ------------------------
    h = jnp.zeros((B, HD), dtype=jnp.float32)
    for t in range(sub):
        h = jnp.tanh(x_steps[t]
                     + jnp.dot(h.astype(jnp.bfloat16), whh_m_bf,
                               preferred_element_type=jnp.float32))

    # ---- (5) fc on the last-time-step output --------------------------------
    out_ref[...] = (jnp.dot(h, wfc_ref[...], preferred_element_type=jnp.float32)
                    + bfc_ref[...])


def proofreader_pallas(x_vec_blsv, params):
    """x_vec_blsv: (B, L, SUB, V) float32 (already encoded + transposed)."""
    B, L, S, v = x_vec_blsv.shape
    HD = params["whh_s"].shape[0]
    OUT = params["wfc"].shape[0]

    # Pad SUB rows 5 -> 8 (full 8-sublane vregs in the recurrence; padded rows
    # evolve independently and are ignored) and flatten x into one
    # lane/sublane-friendly slab for the single upfront projection matmul.
    x_pad = jnp.pad(x_vec_blsv, ((0, 0), (0, 0), (0, SUBP - S), (0, 0)))
    x_flat = x_pad.reshape(B * L * SUBP, v)

    # Pre-transpose weights, fold the two RNN biases together (pure glue).
    wih_s_t = params["wih_s"].T                              # (V, HD)
    whh_s_t = params["whh_s"].T                              # (HD, HD)
    b_s = (params["bih_s"] + params["bhh_s"]).reshape(1, HD)
    wih_t = params["wih"].T                                  # (HD, HD)
    whh_t = params["whh"].T                                  # (HD, HD)
    b_m = (params["bih"] + params["bhh"]).reshape(1, HD)
    wfc_t = params["wfc"].T                                  # (HD, OUT)
    bfc = params["bfc"].reshape(1, OUT)

    vmem = pl.BlockSpec(memory_space=pltpu.MemorySpace.VMEM)
    kernel = functools.partial(proofreader_kernel, batch=B, seq_len=L, sub=S)
    return pl.pallas_call(
        kernel,
        out_shape=jax.ShapeDtypeStruct((B, OUT), jnp.float32),
        in_specs=[vmem] * 9,
        out_specs=vmem,
    )(x_flat, wih_s_t, whh_s_t, b_s, wih_t, whh_t, b_m, wfc_t, bfc)


def proofreader_reference(x_vec_bslv, params):
    """Pure-JAX f32 reference with PyTorch semantics. x: (B, SUB, L, V)."""
    B, S, L, v = x_vec_bslv.shape
    HD = params["whh_s"].shape[0]
    with jax.default_matmul_precision("highest"):
        h_sub = jnp.zeros((S, HD), jnp.float32)
        sub_out = []
        for b in range(B):
            for t in range(L):
                xt = x_vec_bslv[b, :, t, :]                  # (SUB, V)
                h_sub = jnp.tanh(xt @ params["wih_s"].T + h_sub @ params["whh_s"].T
                                 + params["bih_s"] + params["bhh_s"])
            sub_out.append(h_sub)                            # _out[:, -1, :]
        sub_out = jnp.stack(sub_out, 0)                      # (B, SUB, HD)
        h = jnp.zeros((B, HD), jnp.float32)
        for t in range(S):
            xt = sub_out[:, t, :]
            h = jnp.tanh(xt @ params["wih"].T + h @ params["whh"].T
                         + params["bih"] + params["bhh"])
        return h @ params["wfc"].T + params["bfc"]


if __name__ == "__main__":
    # --- small, module-consistent shapes ---
    B = 2            # batch
    L = 8            # char sequence length
    HD = 128         # hidden_dim (must equal sub_rnn_output=128)
    OUT = 8          # output_size
    VOCAB = 64

    key = jax.random.PRNGKey(0)
    ks = jax.random.split(key, 12)
    k_rnn = 1.0 / np.sqrt(HD)
    k_fc = 1.0 / np.sqrt(HD)

    params = {
        # sub_rnn: nn.RNN(5, HD)
        "wih_s": jax.random.uniform(ks[0], (HD, V), jnp.float32, -k_rnn, k_rnn),
        "whh_s": jax.random.uniform(ks[1], (HD, HD), jnp.float32, -k_rnn, k_rnn),
        "bih_s": jax.random.uniform(ks[2], (HD,), jnp.float32, -k_rnn, k_rnn),
        "bhh_s": jax.random.uniform(ks[3], (HD,), jnp.float32, -k_rnn, k_rnn),
        # rnn: nn.RNN(128, HD)
        "wih": jax.random.uniform(ks[4], (HD, HD), jnp.float32, -k_rnn, k_rnn),
        "whh": jax.random.uniform(ks[5], (HD, HD), jnp.float32, -k_rnn, k_rnn),
        "bih": jax.random.uniform(ks[6], (HD,), jnp.float32, -k_rnn, k_rnn),
        "bhh": jax.random.uniform(ks[7], (HD,), jnp.float32, -k_rnn, k_rnn),
        # fc: nn.Linear(HD, OUT)
        "wfc": jax.random.uniform(ks[8], (OUT, HD), jnp.float32, -k_fc, k_fc),
        "bfc": jax.random.uniform(ks[9], (OUT,), jnp.float32, -k_fc, k_fc),
        # CharToVec stand-in: embedding table
        "embed": jax.random.normal(ks[10], (VOCAB, V), jnp.float32),
    }

    # char-id input, shape (B, SUB, L)
    x_ids = jax.random.randint(ks[11], (B, SUB, L), 0, VOCAB, dtype=jnp.int32)

    # encoder (glue): ids -> vectors (PyTorch layout), then kernel layout
    x_vec_bslv = params["embed"][x_ids]                         # (B, SUB, L, V)
    x_vec_blsv = jnp.transpose(x_vec_bslv, (0, 2, 1, 3))        # (B, L, SUB, V)

    out = proofreader_pallas(x_vec_blsv, params)
    out = jax.block_until_ready(out)

    ref = jax.block_until_ready(proofreader_reference(x_vec_bslv, params))
    assert out.shape == (B, OUT)
    # Tolerance relaxed vs the all-f32 kernel: the recurrent matmul operands
    # are bf16 (per perf review, ~3x per-step MXU latency win); the contractive
    # tanh chain keeps the resulting drift at O(1e-3) against the f32 reference.
    if not np.allclose(np.asarray(out), np.asarray(ref), rtol=2e-2, atol=2e-2):
        raise AssertionError("Pallas output does not match reference")

    print("KERNEL_OK")
</pallas_src>

<mosaic_0001>
module attributes {stable_mosaic.version = 11 : i64} {
  func.func @proofreader_kernel(%arg0: memref<128x5xf32, #tpu.memory_space<vmem>>, %arg1: memref<5x128xf32, #tpu.memory_space<vmem>>, %arg2: memref<128x128xf32, #tpu.memory_space<vmem>>, %arg3: memref<1x128xf32, #tpu.memory_space<vmem>>, %arg4: memref<128x128xf32, #tpu.memory_space<vmem>>, %arg5: memref<128x128xf32, #tpu.memory_space<vmem>>, %arg6: memref<1x128xf32, #tpu.memory_space<vmem>>, %arg7: memref<128x8xf32, #tpu.memory_space<vmem>>, %arg8: memref<1x8xf32, #tpu.memory_space<vmem>>, %arg9: memref<2x8xf32, #tpu.memory_space<vmem>>) attributes {dimension_semantics = [], scalar_prefetch = 0 : i64, scratch_operands = 0 : i64, tpu.core_type = #tpu.core_type<tc>} {
    %c0 = arith.constant 0 : index
    %c0_0 = arith.constant 0 : index
    %0 = vector.load %arg0[%c0, %c0_0] : memref<128x5xf32, #tpu.memory_space<vmem>>, vector<128x5xf32>
    %c0_1 = arith.constant 0 : index
    %c0_2 = arith.constant 0 : index
    %1 = vector.load %arg1[%c0_1, %c0_2] : memref<5x128xf32, #tpu.memory_space<vmem>>, vector<5x128xf32>
    %cst = arith.constant dense<0.000000e+00> : vector<128x128xf32>
    %2 = tpu.matmul %0, %1, %cst {dimension_numbers = #tpu.dot_dimension_numbers<[1], [0], [0], [1], [0, 0, 1, 1], [], []>} : vector<128x5xf32>, vector<5x128xf32>, vector<128x128xf32> -> vector<128x128xf32>
    %c0_3 = arith.constant 0 : index
    %c0_4 = arith.constant 0 : index
    %3 = vector.load %arg3[%c0_3, %c0_4] : memref<1x128xf32, #tpu.memory_space<vmem>>, vector<1x128xf32>
    %4 = vector.broadcast %3 : vector<1x128xf32> to vector<128x128xf32>
    %5 = arith.addf %2, %4 : vector<128x128xf32>
    %c0_5 = arith.constant 0 : index
    %c0_6 = arith.constant 0 : index
    %6 = vector.load %arg2[%c0_5, %c0_6] : memref<128x128xf32, #tpu.memory_space<vmem>>, vector<128x128xf32>
    %7 = arith.truncf %6 : vector<128x128xf32> to vector<128x128xbf16>
    %c0_7 = arith.constant 0 : index
    %c0_8 = arith.constant 0 : index
    %8 = vector.load %arg5[%c0_7, %c0_8] : memref<128x128xf32, #tpu.memory_space<vmem>>, vector<128x128xf32>
    %9 = arith.truncf %8 : vector<128x128xf32> to vector<128x128xbf16>
    %c0_9 = arith.constant 0 : index
    %c0_10 = arith.constant 0 : index
    %10 = vector.load %arg4[%c0_9, %c0_10] : memref<128x128xf32, #tpu.memory_space<vmem>>, vector<128x128xf32>
    %c0_11 = arith.constant 0 : index
    %c0_12 = arith.constant 0 : index
    %11 = vector.load %arg6[%c0_11, %c0_12] : memref<1x128xf32, #tpu.memory_space<vmem>>, vector<1x128xf32>
    %cst_13 = arith.constant 0.000000e+00 : f32
    %12 = vector.broadcast %cst_13 : f32 to vector<8x128xf32>
    %13 = vector.extract_strided_slice %5 {offsets = [0, 0], sizes = [8, 128], strides = [1, 1]} : vector<128x128xf32> to vector<8x128xf32>
    %14 = arith.truncf %12 : vector<8x128xf32> to vector<8x128xbf16>
    %cst_14 = arith.constant dense<0.000000e+00> : vector<8x128xf32>
    %15 = tpu.matmul %14, %7, %cst_14 {dimension_numbers = #tpu.dot_dimension_numbers<[1], [0], [0], [1], [0, 0, 1, 1], [], []>} : vector<8x128xbf16>, vector<128x128xbf16>, vector<8x128xf32> -> vector<8x128xf32>
    %16 = arith.addf %13, %15 : vector<8x128xf32>
    %17 = math.tanh %16 : vector<8x128xf32>
    %18 = vector.extract_strided_slice %5 {offsets = [8, 0], sizes = [8, 128], strides = [1, 1]} : vector<128x128xf32> to vector<8x128xf32>
    %19 = arith.truncf %17 : vector<8x128xf32> to vector<8x128xbf16>
    %cst_15 = arith.constant dense<0.000000e+00> : vector<8x128xf32>
    %20 = tpu.matmul %19, %7, %cst_15 {dimension_numbers = #tpu.dot_dimension_numbers<[1], [0], [0], [1], [0, 0, 1, 1], [], []>} : vector<8x128xbf16>, vector<128x128xbf16>, vector<8x128xf32> -> vector<8x128xf32>
    %21 = arith.addf %18, %20 : vector<8x128xf32>
    %22 = math.tanh %21 : vector<8x128xf32>
    %23 = vector.extract_strided_slice %5 {offsets = [16, 0], sizes = [8, 128], strides = [1, 1]} : vector<128x128xf32> to vector<8x128xf32>
    %24 = arith.truncf %22 : vector<8x128xf32> to vector<8x128xbf16>
    %cst_16 = arith.constant dense<0.000000e+00> : vector<8x128xf32>
    %25 = tpu.matmul %24, %7, %cst_16 {dimension_numbers = #tpu.dot_dimension_numbers<[1], [0], [0], [1], [0, 0, 1, 1], [], []>} : vector<8x128xbf16>, vector<128x128xbf16>, vector<8x128xf32> -> vector<8x128xf32>
    %26 = arith.addf %23, %25 : vector<8x128xf32>
    %27 = math.tanh %26 : vector<8x128xf32>
    %28 = vector.extract_strided_slice %5 {offsets = [24, 0], sizes = [8, 128], strides = [1, 1]} : vector<128x128xf32> to vector<8x128xf32>
    %29 = arith.truncf %27 : vector<8x128xf32> to vector<8x128xbf16>
    %cst_17 = arith.constant dense<0.000000e+00> : vector<8x128xf32>
    %30 = tpu.matmul %29, %7, %cst_17 {dimension_numbers = #tpu.dot_dimension_numbers<[1], [0], [0], [1], [0, 0, 1, 1], [], []>} : vector<8x128xbf16>, vector<128x128xbf16>, vector<8x128xf32> -> vector<8x128xf32>
    %31 = arith.addf %28, %30 : vector<8x128xf32>
    %32 = math.tanh %31 : vector<8x128xf32>
    %33 = vector.extract_strided_slice %5 {offsets = [32, 0], sizes = [8, 128], strides = [1, 1]} : vector<128x128xf32> to vector<8x128xf32>
    %34 = arith.truncf %32 : vector<8x128xf32> to vector<8x128xbf16>
    %cst_18 = arith.constant dense<0.000000e+00> : vector<8x128xf32>
    %35 = tpu.matmul %34, %7, %cst_18 {dimension_numbers = #tpu.dot_dimension_numbers<[1], [0], [0], [1], [0, 0, 1, 1], [], []>} : vector<8x128xbf16>, vector<128x128xbf16>, vector<8x128xf32> -> vector<8x128xf32>
    %36 = arith.addf %33, %35 : vector<8x128xf32>
    %37 = math.tanh %36 : vector<8x128xf32>
    %38 = vector.extract_strided_slice %5 {offsets = [40, 0], sizes = [8, 128], strides = [1, 1]} : vector<128x128xf32> to vector<8x128xf32>
    %39 = arith.truncf %37 : vector<8x128xf32> to vector<8x128xbf16>
    %cst_19 = arith.constant dense<0.000000e+00> : vector<8x128xf32>
    %40 = tpu.matmul %39, %7, %cst_19 {dimension_numbers = #tpu.dot_dimension_numbers<[1], [0], [0], [1], [0, 0, 1, 1], [], []>} : vector<8x128xbf16>, vector<128x128xbf16>, vector<8x128xf32> -> vector<8x128xf32>
    %41 = arith.addf %38, %40 : vector<8x128xf32>
    %42 = math.tanh %41 : vector<8x128xf32>
    %43 = vector.extract_strided_slice %5 {offsets = [48, 0], sizes = [8, 128], strides = [1, 1]} : vector<128x128xf32> to vector<8x128xf32>
    %44 = arith.truncf %42 : vector<8x128xf32> to vector<8x128xbf16>
    %cst_20 = arith.constant dense<0.000000e+00> : vector<8x128xf32>
    %45 = tpu.matmul %44, %7, %cst_20 {dimension_numbers = #tpu.dot_dimension_numbers<[1], [0], [0], [1], [0, 0, 1, 1], [], []>} : vector<8x128xbf16>, vector<128x128xbf16>, vector<8x128xf32> -> vector<8x128xf32>
    %46 = arith.addf %43, %45 : vector<8x128xf32>
    %47 = math.tanh %46 : vector<8x128xf32>
    %48 = vector.extract_strided_slice %5 {offsets = [56, 0], sizes = [8, 128], strides = [1, 1]} : vector<128x128xf32> to vector<8x128xf32>
    %49 = arith.truncf %47 : vector<8x128xf32> to vector<8x128xbf16>
    %cst_21 = arith.constant dense<0.000000e+00> : vector<8x128xf32>
    %50 = tpu.matmul %49, %7, %cst_21 {dimension_numbers = #tpu.dot_dimension_numbers<[1], [0], [0], [1], [0, 0, 1, 1], [], []>} : vector<8x128xbf16>, vector<128x128xbf16>, vector<8x128xf32> -> vector<8x128xf32>
    %51 = arith.addf %48, %50 : vector<8x128xf32>
    %52 = math.tanh %51 : vector<8x128xf32>
    %cst_22 = arith.constant dense<0.000000e+00> : vector<8x128xf32>
    %53 = tpu.matmul %52, %10, %cst_22 {dimension_numbers = #tpu.dot_dimension_numbers<[1], [0], [0], [1], [0, 0, 1, 1], [], []>} : vector<8x128xf32>, vector<128x128xf32>, vector<8x128xf32> -> vector<8x128xf32>
    %54 = vector.broadcast %11 : vector<1x128xf32> to vector<8x128xf32>
    %55 = arith.addf %53, %54 : vector<8x128xf32>
    %56 = vector.extract_strided_slice %5 {offsets = [64, 0], sizes = [8, 128], strides = [1, 1]} : vector<128x128xf32> to vector<8x128xf32>
    %57 = arith.truncf %52 : vector<8x128xf32> to vector<8x128xbf16>
    %cst_23 = arith.constant dense<0.000000e+00> : vector<8x128xf32>
    %58 = tpu.matmul %57, %7, %cst_23 {dimension_numbers = #tpu.dot_dimension_numbers<[1], [0], [0], [1], [0, 0, 1, 1], [], []>} : vector<8x128xbf16>, vector<128x128xbf16>, vector<8x128xf32> -> vector<8x128xf32>
    %59 = arith.addf %56, %58 : vector<8x128xf32>
    %60 = math.tanh %59 : vector<8x128xf32>
    %61 = vector.extract_strided_slice %5 {offsets = [72, 0], sizes = [8, 128], strides = [1, 1]} : vector<128x128xf32> to vector<8x128xf32>
    %62 = arith.truncf %60 : vector<8x128xf32> to vector<8x128xbf16>
    %cst_24 = arith.constant dense<0.000000e+00> : vector<8x128xf32>
    %63 = tpu.matmul %62, %7, %cst_24 {dimension_numbers = #tpu.dot_dimension_numbers<[1], [0], [0], [1], [0, 0, 1, 1], [], []>} : vector<8x128xbf16>, vector<128x128xbf16>, vector<8x128xf32> -> vector<8x128xf32>
    %64 = arith.addf %61, %63 : vector<8x128xf32>
    %65 = math.tanh %64 : vector<8x128xf32>
    %66 = vector.extract_strided_slice %5 {offsets = [80, 0], sizes = [8, 128], strides = [1, 1]} : vector<128x128xf32> to vector<8x128xf32>
    %67 = arith.truncf %65 : vector<8x128xf32> to vector<8x128xbf16>
    %cst_25 = arith.constant dense<0.000000e+00> : vector<8x128xf32>
    %68 = tpu.matmul %67, %7, %cst_25 {dimension_numbers = #tpu.dot_dimension_numbers<[1], [0], [0], [1], [0, 0, 1, 1], [], []>} : vector<8x128xbf16>, vector<128x128xbf16>, vector<8x128xf32> -> vector<8x128xf32>
    %69 = arith.addf %66, %68 : vector<8x128xf32>
    %70 = math.tanh %69 : vector<8x128xf32>
    %71 = vector.extract_strided_slice %5 {offsets = [88, 0], sizes = [8, 128], strides = [1, 1]} : vector<128x128xf32> to vector<8x128xf32>
    %72 = arith.truncf %70 : vector<8x128xf32> to vector<8x128xbf16>
    %cst_26 = arith.constant dense<0.000000e+00> : vector<8x128xf32>
    %73 = tpu.matmul %72, %7, %cst_26 {dimension_numbers = #tpu.dot_dimension_numbers<[1], [0], [0], [1], [0, 0, 1, 1], [], []>} : vector<8x128xbf16>, vector<128x128xbf16>, vector<8x128xf32> -> vector<8x128xf32>
    %74 = arith.addf %71, %73 : vector<8x128xf32>
    %75 = math.tanh %74 : vector<8x128xf32>
    %76 = vector.extract_strided_slice %5 {offsets = [96, 0], sizes = [8, 128], strides = [1, 1]} : vector<128x128xf32> to vector<8x128xf32>
    %77 = arith.truncf %75 : vector<8x128xf32> to vector<8x128xbf16>
    %cst_27 = arith.constant dense<0.000000e+00> : vector<8x128xf32>
    %78 = tpu.matmul %77, %7, %cst_27 {dimension_numbers = #tpu.dot_dimension_numbers<[1], [0], [0], [1], [0, 0, 1, 1], [], []>} : vector<8x128xbf16>, vector<128x128xbf16>, vector<8x128xf32> -> vector<8x128xf32>
    %79 = arith.addf %76, %78 : vector<8x128xf32>
    %80 = math.tanh %79 : vector<8x128xf32>
    %81 = vector.extract_strided_slice %5 {offsets = [104, 0], sizes = [8, 128], strides = [1, 1]} : vector<128x128xf32> to vector<8x128xf32>
    %82 = arith.truncf %80 : vector<8x128xf32> to vector<8x128xbf16>
    %cst_28 = arith.constant dense<0.000000e+00> : vector<8x128xf32>
    %83 = tpu.matmul %82, %7, %cst_28 {dimension_numbers = #tpu.dot_dimension_numbers<[1], [0], [0], [1], [0, 0, 1, 1], [], []>} : vector<8x128xbf16>, vector<128x128xbf16>, vector<8x128xf32> -> vector<8x128xf32>
    %84 = arith.addf %81, %83 : vector<8x128xf32>
    %85 = math.tanh %84 : vector<8x128xf32>
    %86 = vector.extract_strided_slice %5 {offsets = [112, 0], sizes = [8, 128], strides = [1, 1]} : vector<128x128xf32> to vector<8x128xf32>
    %87 = arith.truncf %85 : vector<8x128xf32> to vector<8x128xbf16>
    %cst_29 = arith.constant dense<0.000000e+00> : vector<8x128xf32>
    %88 = tpu.matmul %87, %7, %cst_29 {dimension_numbers = #tpu.dot_dimension_numbers<[1], [0], [0], [1], [0, 0, 1, 1], [], []>} : vector<8x128xbf16>, vector<128x128xbf16>, vector<8x128xf32> -> vector<8x128xf32>
    %89 = arith.addf %86, %88 : vector<8x128xf32>
    %90 = math.tanh %89 : vector<8x128xf32>
    %91 = vector.extract_strided_slice %5 {offsets = [120, 0], sizes = [8, 128], strides = [1, 1]} : vector<128x128xf32> to vector<8x128xf32>
    %92 = arith.truncf %90 : vector<8x128xf32> to vector<8x128xbf16>
    %cst_30 = arith.constant dense<0.000000e+00> : vector<8x128xf32>
    %93 = tpu.matmul %92, %7, %cst_30 {dimension_numbers = #tpu.dot_dimension_numbers<[1], [0], [0], [1], [0, 0, 1, 1], [], []>} : vector<8x128xbf16>, vector<128x128xbf16>, vector<8x128xf32> -> vector<8x128xf32>
    %94 = arith.addf %91, %93 : vector<8x128xf32>
    %95 = math.tanh %94 : vector<8x128xf32>
    %cst_31 = arith.constant dense<0.000000e+00> : vector<8x128xf32>
    %96 = tpu.matmul %95, %10, %cst_31 {dimension_numbers = #tpu.dot_dimension_numbers<[1], [0], [0], [1], [0, 0, 1, 1], [], []>} : vector<8x128xf32>, vector<128x128xf32>, vector<8x128xf32> -> vector<8x128xf32>
    %97 = vector.broadcast %11 : vector<1x128xf32> to vector<8x128xf32>
    %98 = arith.addf %96, %97 : vector<8x128xf32>
    %99 = vector.extract_strided_slice %55 {offsets = [0, 0], sizes = [1, 128], strides = [1, 1]} : vector<8x128xf32> to vector<1x128xf32>
    %100 = vector.extract_strided_slice %98 {offsets = [0, 0], sizes = [1, 128], strides = [1, 1]} : vector<8x128xf32> to vector<1x128xf32>
    %101 = tpu.concatenate %99, %100 in 0 : vector<1x128xf32>, vector<1x128xf32> -> vector<2x128xf32>
    %102 = vector.extract_strided_slice %55 {offsets = [1, 0], sizes = [1, 128], strides = [1, 1]} : vector<8x128xf32> to vector<1x128xf32>
    %103 = vector.extract_strided_slice %98 {offsets = [1, 0], sizes = [1, 128], strides = [1, 1]} : vector<8x128xf32> to vector<1x128xf32>
    %104 = tpu.concatenate %102, %103 in 0 : vector<1x128xf32>, vector<1x128xf32> -> vector<2x128xf32>
    %105 = vector.extract_strided_slice %55 {offsets = [2, 0], sizes = [1, 128], strides = [1, 1]} : vector<8x128xf32> to vector<1x128xf32>
    %106 = vector.extract_strided_slice %98 {offsets = [2, 0], sizes = [1, 128], strides = [1, 1]} : vector<8x128xf32> to vector<1x128xf32>
    %107 = tpu.concatenate %105, %106 in 0 : vector<1x128xf32>, vector<1x128xf32> -> vector<2x128xf32>
    %108 = vector.extract_strided_slice %55 {offsets = [3, 0], sizes = [1, 128], strides = [1, 1]} : vector<8x128xf32> to vector<1x128xf32>
    %109 = vector.extract_strided_slice %98 {offsets = [3, 0], sizes = [1, 128], strides = [1, 1]} : vector<8x128xf32> to vector<1x128xf32>
    %110 = tpu.concatenate %108, %109 in 0 : vector<1x128xf32>, vector<1x128xf32> -> vector<2x128xf32>
    %111 = vector.extract_strided_slice %55 {offsets = [4, 0], sizes = [1, 128], strides = [1, 1]} : vector<8x128xf32> to vector<1x128xf32>
    %112 = vector.extract_strided_slice %98 {offsets = [4, 0], sizes = [1, 128], strides = [1, 1]} : vector<8x128xf32> to vector<1x128xf32>
    %113 = tpu.concatenate %111, %112 in 0 : vector<1x128xf32>, vector<1x128xf32> -> vector<2x128xf32>
    %cst_32 = arith.constant 0.000000e+00 : f32
    %114 = vector.broadcast %cst_32 : f32 to vector<2x128xf32>
    %115 = arith.truncf %114 : vector<2x128xf32> to vector<2x128xbf16>
    %cst_33 = arith.constant dense<0.000000e+00> : vector<2x128xf32>
    %116 = tpu.matmul %115, %9, %cst_33 {dimension_numbers = #tpu.dot_dimension_numbers<[1], [0], [0], [1], [0, 0, 1, 1], [], []>} : vector<2x128xbf16>, vector<128x128xbf16>, vector<2x128xf32> -> vector<2x128xf32>
    %117 = arith.addf %101, %116 : vector<2x128xf32>
    %118 = math.tanh %117 : vector<2x128xf32>
    %119 = arith.truncf %118 : vector<2x128xf32> to vector<2x128xbf16>
    %cst_34 = arith.constant dense<0.000000e+00> : vector<2x128xf32>
    %120 = tpu.matmul %119, %9, %cst_34 {dimension_numbers = #tpu.dot_dimension_numbers<[1], [0], [0], [1], [0, 0, 1, 1], [], []>} : vector<2x128xbf16>, vector<128x128xbf16>, vector<2x128xf32> -> vector<2x128xf32>
    %121 = arith.addf %104, %120 : vector<2x128xf32>
    %122 = math.tanh %121 : vector<2x128xf32>
    %123 = arith.truncf %122 : vector<2x128xf32> to vector<2x128xbf16>
    %cst_35 = arith.constant dense<0.000000e+00> : vector<2x128xf32>
    %124 = tpu.matmul %123, %9, %cst_35 {dimension_numbers = #tpu.dot_dimension_numbers<[1], [0], [0], [1], [0, 0, 1, 1], [], []>} : vector<2x128xbf16>, vector<128x128xbf16>, vector<2x128xf32> -> vector<2x128xf32>
    %125 = arith.addf %107, %124 : vector<2x128xf32>
    %126 = math.tanh %125 : vector<2x128xf32>
    %127 = arith.truncf %126 : vector<2x128xf32> to vector<2x128xbf16>
    %cst_36 = arith.constant dense<0.000000e+00> : vector<2x128xf32>
    %128 = tpu.matmul %127, %9, %cst_36 {dimension_numbers = #tpu.dot_dimension_numbers<[1], [0], [0], [1], [0, 0, 1, 1], [], []>} : vector<2x128xbf16>, vector<128x128xbf16>, vector<2x128xf32> -> vector<2x128xf32>
    %129 = arith.addf %110, %128 : vector<2x128xf32>
    %130 = math.tanh %129 : vector<2x128xf32>
    %131 = arith.truncf %130 : vector<2x128xf32> to vector<2x128xbf16>
    %cst_37 = arith.constant dense<0.000000e+00> : vector<2x128xf32>
    %132 = tpu.matmul %131, %9, %cst_37 {dimension_numbers = #tpu.dot_dimension_numbers<[1], [0], [0], [1], [0, 0, 1, 1], [], []>} : vector<2x128xbf16>, vector<128x128xbf16>, vector<2x128xf32> -> vector<2x128xf32>
    %133 = arith.addf %113, %132 : vector<2x128xf32>
    %134 = math.tanh %133 : vector<2x128xf32>
    %c0_38 = arith.constant 0 : index
    %c0_39 = arith.constant 0 : index
    %135 = vector.load %arg7[%c0_38, %c0_39] : memref<128x8xf32, #tpu.memory_space<vmem>>, vector<128x8xf32>
    %cst_40 = arith.constant dense<0.000000e+00> : vector<2x8xf32>
    %136 = tpu.matmul %134, %135, %cst_40 {dimension_numbers = #tpu.dot_dimension_numbers<[1], [0], [0], [1], [0, 0, 1, 1], [], []>} : vector<2x128xf32>, vector<128x8xf32>, vector<2x8xf32> -> vector<2x8xf32>
    %c0_41 = arith.constant 0 : index
    %c0_42 = arith.constant 0 : index
    %137 = vector.load %arg8[%c0_41, %c0_42] : memref<1x8xf32, #tpu.memory_space<vmem>>, vector<1x8xf32>
    %138 = vector.broadcast %137 : vector<1x8xf32> to vector<2x8xf32>
    %139 = arith.addf %136, %138 : vector<2x8xf32>
    %c0_43 = arith.constant 0 : index
    %c0_44 = arith.constant 0 : index
    %140 = vector.load %arg9[%c0_43, %c0_44] : memref<2x8xf32, #tpu.memory_space<vmem>>, vector<2x8xf32>
    tpu.vector_store %arg9[%c0_43, %c0_44], %139 {strides = array<i32>} : memref<2x8xf32, #tpu.memory_space<vmem>>, vector<2x8xf32>,
    return
  }
}

</mosaic_0001>

<bundles_post_ra>
// kernel: tpu_custom_call.1
= control target key start
LH: loop header
LB: loop body
LE: loop exit
PB: predicated region body
PF: predicated region fallthrough
CT: control target
= control target key end

     0   :  { %14 = vsyncpa [#allocation3], 0  ;;  %s3324_s0 = inlined_call_operand.vmem [shape: f32[128,5], index: 0, kind: input, shape index: {}]   ;;  %s3325_s1 = inlined_call_operand.vmem [shape: f32[5,128], index: 1, kind: input, shape index: {}]   ;;  %s3326_s2 = inlined_call_operand.vmem [shape: f32[128,128], index: 2, kind: input, shape index: {}]   ;;  %s3327_s3 = inlined_call_operand.vmem [shape: f32[1,128], index: 3, kind: input, shape index: {}]   ;;  %s3328_s4 = inlined_call_operand.vmem [shape: f32[128,128], index: 4, kind: input, shape index: {}]   ;;  %s3329_s5 = inlined_call_operand.hbm [shape: f32[128,128], index: 5, kind: input, shape index: {}]   ;;  %s3330_s6 = inlined_call_operand.vmem [shape: f32[1,128], index: 6, kind: input, shape index: {}]   ;;  %s3331_s7 = inlined_call_operand.vmem [shape: f32[128,8], index: 7, kind: input, shape index: {}]   ;;  %s3332_s8 = inlined_call_operand.vmem [shape: f32[1,8], index: 8, kind: input, shape index: {}]   ;;  %s3333_s9 = inlined_call_operand.hbm [shape: f32[2,8], index: 9, kind: output, shape index: {}]  }
   0x1   :  { %15 = vsyncpa [#allocation4], 0  ;;  %s2438_s30 = smov [#allocation2]  }
   0x2   :  { %s31_s10 = sshll.u32 %s2438_s30, 4  ;;  %s32_s10 = int_to_ptr.vmem [resolvable:$true] %s31_s10 }
   0x3   :  { %s2402_s11 = scalar_lea.vmem %s32_s10, 2048  ;;  %p2407_p1 = scmp.lt.s32.totalorder %s32_s10, %s32_s10 }
   0x4   :  { %p2403_p0 = scmp.ne.s32.totalorder %s32_s10, %s2402_s11  ;;  %p2408_p2 = scmp.lt.s32.totalorder %s2402_s11, %s2402_s11 }
   0x6   :  { %p2409_p3 = por %p2408_p2, %p2407_p1 }
   0x8   :  { %p2410_p4 = pnand %p2409_p3, %p2403_p0 }
   0xa   :  { %2413 = shalt.err (!%p2410_p4)
}
   0xb   :  { %s2439_s12 = smov 128   ;;  %s2440_s13 = smov 8  }
   0xc   :  { %37 = dma.hbm_to_vmem [thread:$0]  %s3329_s5, 2048, %s32_s10, [#allocation3], %s2439_s12, %s2439_s12, %s2440_s13  }
   0xd   :  { %2434 = dma.done.wait [#allocation3], 2048  }
   0xe   :  { %2435 = vsyncadd [#allocation3], 4294965248  ;;  %v2441_v0 = vmov 0.0   ;;  %vm2442_vm0 = vmmov 0   ;;  %v284_v1 = vld [vmem:[%s3326_s2 + $0x70] sm:$0xff]  ;;  %v285_v2 = vld [vmem:[%s3326_s2 + $0x78] sm:$0xff] }
   0xf   :  { %1819 = vmatprep.subr.bf16.mxu1 %v2441_v0  ;;  %1835 = vmatprep.mubr.msk.bf16.mxu1 %vm2442_vm0, %v2441_v0  ;;  %v282_v3 = vld [vmem:[%s3326_s2 + $0x60] sm:$0xff]  ;;  %v2510_v4 = vpack.c.bf16 %v285_v2, %v284_v1  ;;  %v283_v5 = vld [vmem:[%s3326_s2 + $0x68] sm:$0xff]  ;;  %vm121_vm1 = vcmask 1044480   ;;  %vm72_vm2 = vcmask 39936   ;;  %v280_v7 = vld [vmem:[%s3326_s2 + $0x50] sm:$0xff]  ;;  %v2443_v32 = vmov 0  }
  0x10   :  { %v2516_v6 = vpack.c.bf16 %v283_v5, %v282_v3  ;;  %v281_v8 = vld [vmem:[%s3326_s2 + $0x58] sm:$0xff]  ;;  %v64_v9 = vld [vmem:[%s3325_s1] sm:$0x1f]  ;;  %v49_v11 = vld [vmem:[%s3324_s0 + $0x8] sm:$0xff]  ;;  %vm1171_vm3 = vcmask 1040384   ;;  %s2444_s25 = smov [#allocation5]  }
  0x11   :  { %1820 = vmatpush3.bf16.msra.mxu1 %v2510_v4  ;;  %v48_v10 = vld [vmem:[%s3324_s0] sm:$0xff]  ;;  %1793 = vmatprep.subr.msk.mxu0 %vm121_vm1, %v64_v9  ;;  %v50_v12 = vld [vmem:[%s3324_s0 + $0x10] sm:$0xff]  ;;  %v2539_v13 = vpack.c.bf16 %v281_v8, %v280_v7  ;;  %v279_v15 = vld [vmem:[%s3326_s2 + $0x48] sm:$0xff]  ;;  %s1507_s26 = sshll.u32 %s2444_s25, 4  ;;  %vm1499_vm4 = vcmask 58368   ;;  %s1508_s26 = int_to_ptr.vmem [resolvable:$true] %s1507_s26 }
  0x12   :  { %1821 = vmatprep.subr.bf16.mxu1 %v2441_v0  ;;  %1795 = vmatprep.mubr.msk.f32.mxu0 %vm72_vm2, %v48_v10  ;;  %v278_v14 = vld [vmem:[%s3326_s2 + $0x40] sm:$0xff]  ;;  %v51_v16 = vld [vmem:[%s3324_s0 + $0x18] sm:$0xff]  ;;  %v276_v19 = vld [vmem:[%s3326_s2 + $0x30] sm:$0xff]  ;;  %p2419_p6 = scmp.lt.s32.totalorder %s1508_s26, %s1508_s26 }
  0x13   :  { %1794 = vmatpush3.msk.msra.mxu0 %vm121_vm1, %v64_v9  ;;  %v52_v17 = vld [vmem:[%s3324_s0 + $0x20] sm:$0xff]  ;;  %v2560_v18 = vpack.c.bf16 %v279_v15, %v278_v14  ;;  %v277_v20 = vld [vmem:[%s3326_s2 + $0x38] sm:$0xff]  ;;  %v53_v21 = vld [vmem:[%s3324_s0 + $0x28] sm:$0xff] }
  0x14   :  { %1796 = vmatmul.mubr.msk.f32.vlgmr.msra.gmra.mxu0 %vm72_vm2, %v49_v11  ;;  %1839 = vmatprep.subr.bf16.mxu0 %v2441_v0  ;;  %v2577_v22 = vpack.c.bf16 %v277_v20, %v276_v19  ;;  %v274_v23 = vld [vmem:[%s3326_s2 + $0x20] sm:$0xff]  ;;  %v275_v24 = vld [vmem:[%s3326_s2 + $0x28] sm:$0xff]  ;;  %v272_v26 = vld [vmem:[%s3326_s2 + $0x10] sm:$0xff] }
  0x15   :  { %1822 = vmatpush3.bf16.msra.mxu1 %v2516_v6  ;;  %1840 = vmatpush3.bf16.msra.mxu0 %v2510_v4  ;;  %v2590_v25 = vpack.c.bf16 %v275_v24, %v274_v23  ;;  %v273_v27 = vld [vmem:[%s3326_s2 + $0x18] sm:$0xff]  ;;  %v270_v29 = vld [vmem:[%s3326_s2] sm:$0xff]  ;;  %v271_v30 = vld [vmem:[%s3326_s2 + $0x8] sm:$0xff] }
  0x16   :  { %1823 = vmatprep.subr.bf16.mxu1 %v2441_v0  ;;  %1798 = vmatprep.mubr.msk.f32.mxu0 %vm72_vm2, %v50_v12  ;;  %v2602_v28 = vpack.c.bf16 %v273_v27, %v272_v26  ;;  %v2614_v31 = vpack.c.bf16 %v271_v30, %v270_v29  ;;  %v54_v33 = vld [vmem:[%s3324_s0 + $0x30] sm:$0xff]  ;;  %v55_v34 = vld [vmem:[%s3324_s0 + $0x38] sm:$0xff]  ;;  %v56_v35 = vld [vmem:[%s3324_s0 + $0x40] sm:$0xff] }
  0x17   :  { %1841 = vmatprep.subr.bf16.mxu0 %v2441_v0  ;;  %v57_v36 = vld [vmem:[%s3324_s0 + $0x48] sm:$0xff]  ;;  %v58_v37 = vld [vmem:[%s3324_s0 + $0x50] sm:$0xff]  ;;  %v59_v38 = vld [vmem:[%s3324_s0 + $0x58] sm:$0xff] }
  0x18   :  { %1799 = vmatmul.mubr.msk.f32.gmra.mxu0 %vm72_vm2, %v51_v16  ;;  %v60_v39 = vld [vmem:[%s3324_s0 + $0x60] sm:$0xff]  ;;  %v61_v40 = vld [vmem:[%s3324_s0 + $0x68] sm:$0xff]  ;;  %v62_v41 = vld [vmem:[%s3324_s0 + $0x70] sm:$0xff] }
  0x19   :  { %1824 = vmatpush3.bf16.msra.mxu1 %v2539_v13  ;;  %1801 = vmatprep.mubr.msk.f32.mxu0 %vm72_vm2, %v52_v17  ;;  %v63_v42 = vld [vmem:[%s3324_s0 + $0x78] sm:$0xff]  ;;  %v2689_v44 = vld [vmem:[%s3327_s3] ss:$0 sm:$0xff] }
  0x1a   :  { %1825 = vmatprep.subr.bf16.mxu1 %v2441_v0  ;;  %1842 = vmatpush3.bf16.msra.mxu0 %v2516_v6 }
  0x1b   :  { %1843 = vmatprep.subr.bf16.mxu0 %v2441_v0 }
  0x1c   :  { %1802 = vmatmul.mubr.msk.f32.gmra.mxu0 %vm72_vm2, %v53_v21 }
  0x1d   :  { %1826 = vmatpush3.bf16.msra.mxu1 %v2560_v18  ;;  %1804 = vmatprep.mubr.msk.f32.mxu0 %vm72_vm2, %v54_v33 }
  0x1e   :  { %1827 = vmatprep.subr.bf16.mxu1 %v2441_v0  ;;  %1844 = vmatpush3.bf16.msra.mxu0 %v2539_v13 }
  0x1f   :  { %1845 = vmatprep.subr.bf16.mxu0 %v2441_v0 }
  0x20   :  { %1805 = vmatmul.mubr.msk.f32.gmra.mxu0 %vm72_vm2, %v55_v34 }
  0x21   :  { %1828 = vmatpush3.bf16.msra.mxu1 %v2577_v22  ;;  %1807 = vmatprep.mubr.msk.f32.mxu0 %vm72_vm2, %v56_v35 }
  0x22   :  { %1829 = vmatprep.subr.bf16.mxu1 %v2441_v0  ;;  %1846 = vmatpush3.bf16.msra.mxu0 %v2560_v18 }
  0x23   :  { %1847 = vmatprep.subr.bf16.mxu0 %v2441_v0 }
  0x24   :  { %1808 = vmatmul.mubr.msk.f32.gmra.mxu0 %vm72_vm2, %v57_v36 }
  0x25   :  { %1830 = vmatpush3.bf16.msra.mxu1 %v2590_v25  ;;  %1810 = vmatprep.mubr.msk.f32.mxu0 %vm72_vm2, %v58_v37 }
  0x26   :  { %1831 = vmatprep.subr.bf16.mxu1 %v2441_v0  ;;  %1848 = vmatpush3.bf16.msra.mxu0 %v2577_v22 }
  0x27   :  { %1849 = vmatprep.subr.bf16.mxu0 %v2441_v0 }
  0x28   :  { %1811 = vmatmul.mubr.msk.f32.gmra.mxu0 %vm72_vm2, %v59_v38 }
  0x29   :  { %1832 = vmatpush3.bf16.msra.mxu1 %v2602_v28  ;;  %1813 = vmatprep.mubr.msk.f32.mxu0 %vm72_vm2, %v60_v39 }
  0x2a   :  { %1833 = vmatprep.subr.bf16.mxu1 %v2441_v0  ;;  %1850 = vmatpush3.bf16.msra.mxu0 %v2590_v25 }
  0x2b   :  { %1851 = vmatprep.subr.bf16.mxu0 %v2441_v0 }
  0x2c   :  { %1814 = vmatmul.mubr.msk.f32.gmra.mxu0 %vm72_vm2, %v61_v40 }
  0x2d   :  { %1834 = vmatpush3.bf16.msra.mxu1 %v2614_v31  ;;  %1816 = vmatprep.mubr.msk.f32.mxu0 %vm72_vm2, %v62_v41 }
  0x2e   :  { %1859 = vmatprep.subr.bf16.mxu1 %v2441_v0  ;;  %1852 = vmatpush3.bf16.msra.mxu0 %v2602_v28 }
  0x2f   :  { %1853 = vmatprep.subr.bf16.mxu0 %v2441_v0 }
  0x30   :  { %1836 = vmatmul.mubr.bf16.vlgmr.msra.gmra.mxu1 %v2443_v32  ;;  %1817 = vmatmul.mubr.msk.f32.gmra.mxu0 %vm72_vm2, %v63_v42 }
  0x31   :  { %1860 = vmatpush3.bf16.msra.mxu1 %v2510_v4  ;;  %1875 = vmatprep.mubr.msk.bf16.mxu1 %vm2442_vm0, %v2441_v0 }
  0x32   :  { %1861 = vmatprep.subr.bf16.mxu1 %v2441_v0  ;;  %1854 = vmatpush3.bf16.msra.mxu0 %v2614_v31 }
  0x33   :  { %1879 = vmatprep.subr.bf16.mxu0 %v2441_v0  ;;  %1855 = vmatprep.mubr.msk.bf16.mxu0 %vm2442_vm0, %v2441_v0 }
  0x35   :  { %1862 = vmatpush3.bf16.msra.mxu1 %v2516_v6 }
  0x36   :  { %1863 = vmatprep.subr.bf16.mxu1 %v2441_v0 }
  0x39   :  { %1864 = vmatpush3.bf16.msra.mxu1 %v2539_v13 }
  0x3a   :  { %1865 = vmatprep.subr.bf16.mxu1 %v2441_v0 }
  0x3d   :  { %1866 = vmatpush3.bf16.msra.mxu1 %v2560_v18 }
  0x3e   :  { %1867 = vmatprep.subr.bf16.mxu1 %v2441_v0 }
  0x41   :  { %1868 = vmatpush3.bf16.msra.mxu1 %v2577_v22 }
  0x42   :  { %1869 = vmatprep.subr.bf16.mxu1 %v2441_v0 }
  0x45   :  { %1870 = vmatpush3.bf16.msra.mxu1 %v2590_v25 }
  0x46   :  { %1871 = vmatprep.subr.bf16.mxu1 %v2441_v0 }
  0x49   :  { %1872 = vmatpush3.bf16.msra.mxu1 %v2602_v28 }
  0x4a   :  { %1873 = vmatprep.subr.bf16.mxu1 %v2441_v0 }
  0x4d   :  { %1874 = vmatpush3.bf16.msra.mxu1 %v2614_v31 }
  0x4e   :  { %1899 = vmatprep.subr.bf16.mxu1 %v2441_v0 }
  0xd4   :  { %v1797_v43 = vpop.f32.mrf.mxu0 }
  0xd5   :  { %v197_v7 = vadd.f32 %v1797_v43, %v2689_v44 }
  0xd6   :  { %v191_v45 = vpop.f32.mrf.mxu0 }
  0xd7   :  { %v192_v46 = vadd.f32 %v2689_v44, %v191_v45 }
  0xd8   :  { %v2710_v54 = vpop.f32.mrf.mxu0 }
  0xd9   :  { %v207_v27 = vadd.f32 %v2710_v54, %v2689_v44 }
  0xda   :  { %v201_v55 = vpop.f32.mrf.mxu0 }
  0xdb   :  { %v202_v16 = vadd.f32 %v2689_v44, %v201_v55  ;;  %v2821_v55 = vld [vmem:[%s3328_s4 + $0x78] sm:$0xff] }
  0xdc   :  { %v2712_v56 = vpop.f32.mrf.mxu0 }
  0xde   :  { %v2714_v57 = vpop.f32.mrf.mxu0 }
  0xdf   :  { %v212_v38 = vadd.f32 %v2689_v44, %v2714_v57  ;;  %v2833_v57 = vld [vmem:[%s3328_s4 + $0x68] sm:$0xff] }
  0xe0   :  { %v2716_v58 = vpop.f32.mrf.mxu0 }
  0xe2   :  { %v2718_v59 = vpop.f32.mrf.mxu0 }
  0xe4   :  { %v2720_v60 = vpop.f32.mrf.mxu0 }
  0xe6   :  { %v2722_v61 = vpop.f32.mrf.mxu0 }
  0xe8   :  { %v2724_v62 = vpop.f32.mrf.mxu0 }
  0xea   :  { %v2726_v63 = vpop.f32.mrf.mxu0 }
  0xec   :  { %v2728_v1 = vpop.f32.mrf.mxu0 }
  0xee   :  { %v2730_v2 = vpop.f32.mrf.mxu0 }
  0xf0   :  { %v369_v47 = vpop.f32.mrf.mxu1  ;;  %v2732_v3 = vpop.f32.mrf.mxu0 }
  0xf1   :  { %v375_v48 = vadd.f32 %v369_v47, %v192_v46  ;;  %v217_v47 = vadd.f32 %v2712_v56, %v2689_v44  ;;  %v2826_v56 = vld [vmem:[%s3328_s4 + $0x70] sm:$0xff] }
  0xf2   :  { %v1837_v49 = vpop.f32.mrf.mxu1  ;;  %v2734_v5 = vpop.f32.mrf.mxu0 }
  0xf3   :  { %2351 = vtanh.f32 %v375_v48 }
  0xf4   :  { %v372_v50 = vpop.f32.mrf.mxu1 }
  0xf6   :  { %v1838_v51 = vpop.f32.mrf.mxu1 }
 0x100   :  { %v2352_v52 = vpop.eup %2351 }
 0x101   :  { %v377_v53 = vpack.c.bf16 %v2352_v52, %v2352_v52 }
 0x103   :  { %1856 = vmatmul.mubr.bf16.vlgmr.msra.gmra.mxu0 %v377_v53 }
 0x104   :  { %1880 = vmatpush3.bf16.msra.mxu0 %v2510_v4  ;;  %1895 = vmatprep.mubr.msk.bf16.mxu0 %vm2442_vm0, %v2441_v0 }
 0x105   :  { %1881 = vmatprep.subr.bf16.mxu0 %v2441_v0 }
 0x108   :  { %1882 = vmatpush3.bf16.msra.mxu0 %v2516_v6 }
 0x109   :  { %1883 = vmatprep.subr.bf16.mxu0 %v2441_v0 }
 0x10c   :  { %1884 = vmatpush3.bf16.msra.mxu0 %v2539_v13 }
 0x10d   :  { %1885 = vmatprep.subr.bf16.mxu0 %v2441_v0 }
 0x110   :  { %1886 = vmatpush3.bf16.msra.mxu0 %v2560_v18 }
 0x111   :  { %1887 = vmatprep.subr.bf16.mxu0 %v2441_v0 }
 0x114   :  { %1888 = vmatpush3.bf16.msra.mxu0 %v2577_v22 }
 0x115   :  { %1889 = vmatprep.subr.bf16.mxu0 %v2441_v0 }
 0x118   :  { %1890 = vmatpush3.bf16.msra.mxu0 %v2590_v25 }
 0x119   :  { %1891 = vmatprep.subr.bf16.mxu0 %v2441_v0 }
 0x11c   :  { %1892 = vmatpush3.bf16.msra.mxu0 %v2602_v28 }
 0x11d   :  { %1893 = vmatprep.subr.bf16.mxu0 %v2441_v0 }
 0x120   :  { %1894 = vmatpush3.bf16.msra.mxu0 %v2614_v31 }
 0x121   :  { %1919 = vmatprep.subr.bf16.mxu0 %v2441_v0 }
 0x1c3   :  { %v412_v8 = vpop.f32.mrf.mxu0 }
 0x1c4   :  { %v418_v9 = vadd.f32 %v412_v8, %v197_v7  ;;  %v2840_v7 = vld [vmem:[%s3328_s4 + $0x60] sm:$0xff]  ;;  %v2847_v8 = vld [vmem:[%s3328_s4 + $0x58] sm:$0xff] }
 0x1c5   :  { %v1857_v10 = vpop.f32.mrf.mxu0 }
 0x1c6   :  { %2353 = vtanh.f32 %v418_v9  ;;  %v2854_v9 = vld [vmem:[%s3328_s4 + $0x50] sm:$0xff]  ;;  %v2861_v10 = vld [vmem:[%s3328_s4 + $0x48] sm:$0xff] }
 0x1c7   :  { %v415_v11 = vpop.f32.mrf.mxu0 }
 0x1c8   :  { %v222_v11 = vadd.f32 %v2689_v44, %v2718_v59  ;;  %v2890_v59 = vld [vmem:[%s3328_s4 + $0x40] sm:$0xff] }
 0x1c9   :  { %v1858_v12 = vpop.f32.mrf.mxu0 }
 0x1d3   :  { %v2354_v14 = vpop.eup %2353 }
 0x1d4   :  { %v420_v15 = vpack.c.bf16 %v2354_v14, %v2354_v14 }
 0x1d6   :  { %1876 = vmatmul.mubr.bf16.vlgmr.msra.gmra.mxu1 %v420_v15 }
 0x1d7   :  { %1900 = vmatpush3.bf16.msra.mxu1 %v2510_v4  ;;  %1915 = vmatprep.mubr.msk.bf16.mxu1 %vm2442_vm0, %v2441_v0 }
 0x1d8   :  { %1901 = vmatprep.subr.bf16.mxu1 %v2441_v0 }
 0x1db   :  { %1902 = vmatpush3.bf16.msra.mxu1 %v2516_v6 }
 0x1dc   :  { %1903 = vmatprep.subr.bf16.mxu1 %v2441_v0 }
 0x1df   :  { %1904 = vmatpush3.bf16.msra.mxu1 %v2539_v13 }
 0x1e0   :  { %1905 = vmatprep.subr.bf16.mxu1 %v2441_v0 }
 0x1e3   :  { %1906 = vmatpush3.bf16.msra.mxu1 %v2560_v18 }
 0x1e4   :  { %1907 = vmatprep.subr.bf16.mxu1 %v2441_v0 }
 0x1e7   :  { %1908 = vmatpush3.bf16.msra.mxu1 %v2577_v22 }
 0x1e8   :  { %1909 = vmatprep.subr.bf16.mxu1 %v2441_v0 }
 0x1eb   :  { %1910 = vmatpush3.bf16.msra.mxu1 %v2590_v25 }
 0x1ec   :  { %1911 = vmatprep.subr.bf16.mxu1 %v2441_v0 }
 0x1ef   :  { %1912 = vmatpush3.bf16.msra.mxu1 %v2602_v28 }
 0x1f0   :  { %1913 = vmatprep.subr.bf16.mxu1 %v2441_v0 }
 0x1f3   :  { %1914 = vmatpush3.bf16.msra.mxu1 %v2614_v31 }
 0x1f4   :  { %1939 = vmatprep.subr.bf16.mxu1 %v2441_v0 }
 0x296   :  { %v455_v17 = vpop.f32.mrf.mxu1 }
 0x297   :  { %v461_v19 = vadd.f32 %v455_v17, %v202_v16 }
 0x298   :  { %v1877_v20 = vpop.f32.mrf.mxu1 }
 0x299   :  { %2355 = vtanh.f32 %v461_v19 }
 0x29a   :  { %v458_v21 = vpop.f32.mrf.mxu1 }
 0x29b   :  { %v2897_v21 = vld [vmem:[%s3328_s4 + $0x38] sm:$0xff] }
 0x29c   :  { %v1878_v23 = vpop.f32.mrf.mxu1 }
 0x29d   :  { %v2904_v23 = vld [vmem:[%s3328_s4 + $0x30] sm:$0xff] }
 0x2a6   :  { %v2356_v24 = vpop.eup %2355 }
 0x2a7   :  { %v463_v26 = vpack.c.bf16 %v2356_v24, %v2356_v24  ;;  %v2911_v24 = vld [vmem:[%s3328_s4 + $0x28] sm:$0xff] }
 0x2a9   :  { %1896 = vmatmul.mubr.bf16.vlgmr.msra.gmra.mxu0 %v463_v26  ;;  %v2917_v26 = vld [vmem:[%s3328_s4 + $0x20] sm:$0xff] }
 0x2aa   :  { %1920 = vmatpush3.bf16.msra.mxu0 %v2510_v4  ;;  %1935 = vmatprep.mubr.msk.bf16.mxu0 %vm2442_vm0, %v2441_v0 }
 0x2ab   :  { %1921 = vmatprep.subr.bf16.mxu0 %v2441_v0 }
 0x2ae   :  { %1922 = vmatpush3.bf16.msra.mxu0 %v2516_v6 }
 0x2af   :  { %1923 = vmatprep.subr.bf16.mxu0 %v2441_v0 }
 0x2b2   :  { %1924 = vmatpush3.bf16.msra.mxu0 %v2539_v13 }
 0x2b3   :  { %1925 = vmatprep.subr.bf16.mxu0 %v2441_v0 }
 0x2b6   :  { %1926 = vmatpush3.bf16.msra.mxu0 %v2560_v18 }
 0x2b7   :  { %1927 = vmatprep.subr.bf16.mxu0 %v2441_v0 }
 0x2ba   :  { %1928 = vmatpush3.bf16.msra.mxu0 %v2577_v22 }
 0x2bb   :  { %1929 = vmatprep.subr.bf16.mxu0 %v2441_v0 }
 0x2be   :  { %1930 = vmatpush3.bf16.msra.mxu0 %v2590_v25 }
 0x2bf   :  { %1931 = vmatprep.subr.bf16.mxu0 %v2441_v0 }
 0x2c2   :  { %1932 = vmatpush3.bf16.msra.mxu0 %v2602_v28 }
 0x2c3   :  { %1933 = vmatprep.subr.bf16.mxu0 %v2441_v0 }
 0x2c6   :  { %1934 = vmatpush3.bf16.msra.mxu0 %v2614_v31 }
 0x2c7   :  { %1959 = vmatprep.subr.bf16.mxu0 %v2441_v0 }
 0x369   :  { %v498_v29 = vpop.f32.mrf.mxu0 }
 0x36a   :  { %v504_v30 = vadd.f32 %v498_v29, %v207_v27  ;;  %v2923_v27 = vld [vmem:[%s3328_s4 + $0x18] sm:$0xff]  ;;  %v2930_v29 = vld [vmem:[%s3328_s4 + $0x10] sm:$0xff] }
 0x36b   :  { %v1897_v33 = vpop.f32.mrf.mxu0 }
 0x36c   :  { %2357 = vtanh.f32 %v504_v30  ;;  %v2937_v30 = vld [vmem:[%s3328_s4 + $0x8] sm:$0xff]  ;;  %v2944_v33 = vld [vmem:[%s3328_s4] sm:$0xff] }
 0x36d   :  { %v501_v34 = vpop.f32.mrf.mxu0 }
 0x36e   :  { %v227_v34 = vadd.f32 %v2716_v58, %v2689_v44 }
 0x36f   :  { %v1898_v35 = vpop.f32.mrf.mxu0 }
 0x379   :  { %v2358_v36 = vpop.eup %2357 }
 0x37a   :  { %v506_v37 = vpack.c.bf16 %v2358_v36, %v2358_v36 }
 0x37c   :  { %1916 = vmatmul.mubr.bf16.vlgmr.msra.gmra.mxu1 %v506_v37 }
 0x37d   :  { %1940 = vmatpush3.bf16.msra.mxu1 %v2510_v4  ;;  %1955 = vmatprep.mubr.msk.bf16.mxu1 %vm2442_vm0, %v2441_v0 }
 0x37e   :  { %1941 = vmatprep.subr.bf16.mxu1 %v2441_v0 }
 0x381   :  { %1942 = vmatpush3.bf16.msra.mxu1 %v2516_v6 }
 0x382   :  { %1943 = vmatprep.subr.bf16.mxu1 %v2441_v0 }
 0x385   :  { %1944 = vmatpush3.bf16.msra.mxu1 %v2539_v13 }
 0x386   :  { %1945 = vmatprep.subr.bf16.mxu1 %v2441_v0 }
 0x389   :  { %1946 = vmatpush3.bf16.msra.mxu1 %v2560_v18 }
 0x38a   :  { %1947 = vmatprep.subr.bf16.mxu1 %v2441_v0 }
 0x38d   :  { %1948 = vmatpush3.bf16.msra.mxu1 %v2577_v22 }
 0x38e   :  { %1949 = vmatprep.subr.bf16.mxu1 %v2441_v0 }
 0x391   :  { %1950 = vmatpush3.bf16.msra.mxu1 %v2590_v25 }
 0x392   :  { %1951 = vmatprep.subr.bf16.mxu1 %v2441_v0 }
 0x395   :  { %1952 = vmatpush3.bf16.msra.mxu1 %v2602_v28 }
 0x396   :  { %1953 = vmatprep.subr.bf16.mxu1 %v2441_v0 }
 0x399   :  { %1954 = vmatpush3.bf16.msra.mxu1 %v2614_v31 }
 0x39a   :  { %1979 = vmatprep.subr.mxu1 %v2441_v0 }
 0x43c   :  { %v541_v39 = vpop.f32.mrf.mxu1 }
 0x43d   :  { %v547_v40 = vadd.f32 %v541_v39, %v212_v38 }
 0x43e   :  { %v1917_v41 = vpop.f32.mrf.mxu1 }
 0x43f   :  { %2359 = vtanh.f32 %v547_v40 }
 0x440   :  { %v544_v42 = vpop.f32.mrf.mxu1 }
 0x441   :  { %v232_v42 = vadd.f32 %v2689_v44, %v2722_v61  ;;  %v237_v61 = vadd.f32 %v2720_v60, %v2689_v44  ;;  %v242_v60 = vadd.f32 %v2689_v44, %v2726_v63  ;;  %v247_v63 = vadd.f32 %v2724_v62, %v2689_v44 }
 0x442   :  { %v1918_v43 = vpop.f32.mrf.mxu1  ;;  %v252_v62 = vadd.f32 %v2689_v44, %v2730_v2 }
 0x44c   :  { %v2360_v45 = vpop.eup %2359 }
 0x44d   :  { %v549_v46 = vpack.c.bf16 %v2360_v45, %v2360_v45 }
 0x44f   :  { %1936 = vmatmul.mubr.bf16.vlgmr.msra.gmra.mxu0 %v549_v46 }
 0x450   :  { %1960 = vmatpush3.bf16.msra.mxu0 %v2510_v4  ;;  %1975 = vmatprep.mubr.msk.bf16.mxu0 %vm2442_vm0, %v2441_v0 }
 0x451   :  { %1961 = vmatprep.subr.bf16.mxu0 %v2441_v0 }
 0x454   :  { %1962 = vmatpush3.bf16.msra.mxu0 %v2516_v6 }
 0x455   :  { %1963 = vmatprep.subr.bf16.mxu0 %v2441_v0 }
 0x458   :  { %1964 = vmatpush3.bf16.msra.mxu0 %v2539_v13 }
 0x459   :  { %1965 = vmatprep.subr.bf16.mxu0 %v2441_v0 }
 0x45c   :  { %1966 = vmatpush3.bf16.msra.mxu0 %v2560_v18 }
 0x45d   :  { %1967 = vmatprep.subr.bf16.mxu0 %v2441_v0 }
 0x460   :  { %1968 = vmatpush3.bf16.msra.mxu0 %v2577_v22 }
 0x461   :  { %1969 = vmatprep.subr.bf16.mxu0 %v2441_v0 }
 0x464   :  { %1970 = vmatpush3.bf16.msra.mxu0 %v2590_v25 }
 0x465   :  { %1971 = vmatprep.subr.bf16.mxu0 %v2441_v0 }
 0x468   :  { %1972 = vmatpush3.bf16.msra.mxu0 %v2602_v28 }
 0x469   :  { %1973 = vmatprep.subr.bf16.mxu0 %v2441_v0 }
 0x46c   :  { %1974 = vmatpush3.bf16.msra.mxu0 %v2614_v31 }
 0x46d   :  { %2014 = vmatprep.subr.bf16.mxu0 %v2441_v0 }
 0x50f   :  { %v584_v48 = vpop.f32.mrf.mxu0 }
 0x510   :  { %v590_v49 = vadd.f32 %v584_v48, %v217_v47 }
 0x511   :  { %v1937_v50 = vpop.f32.mrf.mxu0 }
 0x512   :  { %2361 = vtanh.f32 %v590_v49 }
 0x513   :  { %v587_v51 = vpop.f32.mrf.mxu0 }
 0x515   :  { %v1938_v52 = vpop.f32.mrf.mxu0 }
 0x51f   :  { %v2362_v53 = vpop.eup %2361 }
 0x520   :  { %v592_v54 = vpack.c.bf16 %v2362_v53, %v2362_v53 }
 0x522   :  { %1956 = vmatmul.mubr.bf16.vlgmr.msra.gmra.mxu1 %v592_v54 }
 0x523   :  { %2011 = vmatprep.mubr.msk.f32.mxu1 %vm2442_vm0, %v2441_v0  ;;  %1980 = vmatpush3.msra.mxu1 %v2821_v55 }
 0x524   :  { %1981 = vmatprep.subr.mxu1 %v2441_v0 }
 0x525   :  { %1982 = vmatpush3.msra.mxu1 %v2826_v56 }
 0x526   :  { %1983 = vmatprep.subr.mxu1 %v2441_v0 }
 0x527   :  { %1984 = vmatpush3.msra.mxu1 %v2833_v57 }
 0x528   :  { %1985 = vmatprep.subr.mxu1 %v2441_v0 }
 0x529   :  { %1986 = vmatpush3.msra.mxu1 %v2840_v7 }
 0x52a   :  { %1987 = vmatprep.subr.mxu1 %v2441_v0 }
 0x52b   :  { %1988 = vmatpush3.msra.mxu1 %v2847_v8 }
 0x52c   :  { %1989 = vmatprep.subr.mxu1 %v2441_v0 }
 0x52d   :  { %1990 = vmatpush3.msra.mxu1 %v2854_v9 }
 0x52e   :  { %1991 = vmatprep.subr.mxu1 %v2441_v0 }
 0x52f   :  { %1992 = vmatpush3.msra.mxu1 %v2861_v10 }
 0x530   :  { %1993 = vmatprep.subr.mxu1 %v2441_v0 }
 0x531   :  { %1994 = vmatpush3.msra.mxu1 %v2890_v59 }
 0x532   :  { %1995 = vmatprep.subr.mxu1 %v2441_v0 }
 0x533   :  { %1996 = vmatpush3.msra.mxu1 %v2897_v21 }
 0x534   :  { %1997 = vmatprep.subr.mxu1 %v2441_v0 }
 0x535   :  { %1998 = vmatpush3.msra.mxu1 %v2904_v23 }
 0x536   :  { %1999 = vmatprep.subr.mxu1 %v2441_v0 }
 0x537   :  { %2000 = vmatpush3.msra.mxu1 %v2911_v24 }
 0x538   :  { %2001 = vmatprep.subr.mxu1 %v2441_v0 }
 0x539   :  { %2002 = vmatpush3.msra.mxu1 %v2917_v26 }
 0x53a   :  { %2003 = vmatprep.subr.mxu1 %v2441_v0 }
 0x53b   :  { %2004 = vmatpush3.msra.mxu1 %v2923_v27 }
 0x53c   :  { %2005 = vmatprep.subr.mxu1 %v2441_v0 }
 0x53d   :  { %2006 = vmatpush3.msra.mxu1 %v2930_v29 }
 0x53e   :  { %2007 = vmatprep.subr.mxu1 %v2441_v0 }
 0x53f   :  { %2008 = vmatpush3.msra.mxu1 %v2937_v30 }
 0x540   :  { %2009 = vmatprep.subr.mxu1 %v2441_v0 }
 0x541   :  { %2010 = vmatpush3.msra.mxu1 %v2944_v33 }
 0x542   :  { %2034 = vmatprep.subr.bf16.mxu1 %v2441_v0 }
 0x5e2   :  { %v627_v12 = vpop.f32.mrf.mxu1 }
 0x5e3   :  { %v633_v14 = vadd.f32 %v627_v12, %v222_v11 }
 0x5e4   :  { %v1957_v15 = vpop.f32.mrf.mxu1 }
 0x5e5   :  { %2363 = vtanh.f32 %v633_v14 }
 0x5e6   :  { %v630_v16 = vpop.f32.mrf.mxu1 }
 0x5e8   :  { %v1958_v17 = vpop.f32.mrf.mxu1 }
 0x5f2   :  { %v2364_v19 = vpop.eup %2363 }
 0x5f3   :  { %v635_v20 = vpack.c.bf16 %v2364_v19, %v2364_v19 }
 0x5f5   :  { %1976 = vmatmul.mubr.bf16.vlgmr.msra.gmra.mxu0 %v635_v20 }
 0x5f6   :  { %2015 = vmatpush3.bf16.msra.mxu0 %v2510_v4  ;;  %2030 = vmatprep.mubr.msk.bf16.mxu0 %vm2442_vm0, %v2441_v0 }
 0x5f7   :  { %2016 = vmatprep.subr.bf16.mxu0 %v2441_v0 }
 0x5fa   :  { %2017 = vmatpush3.bf16.msra.mxu0 %v2516_v6 }
 0x5fb   :  { %2018 = vmatprep.subr.bf16.mxu0 %v2441_v0 }
 0x5fe   :  { %2019 = vmatpush3.bf16.msra.mxu0 %v2539_v13 }
 0x5ff   :  { %2020 = vmatprep.subr.bf16.mxu0 %v2441_v0 }
 0x602   :  { %2021 = vmatpush3.bf16.msra.mxu0 %v2560_v18 }
 0x603   :  { %2022 = vmatprep.subr.bf16.mxu0 %v2441_v0 }
 0x606   :  { %2023 = vmatpush3.bf16.msra.mxu0 %v2577_v22 }
 0x607   :  { %2024 = vmatprep.subr.bf16.mxu0 %v2441_v0 }
 0x60a   :  { %2025 = vmatpush3.bf16.msra.mxu0 %v2590_v25 }
 0x60b   :  { %2026 = vmatprep.subr.bf16.mxu0 %v2441_v0 }
 0x60e   :  { %2027 = vmatpush3.bf16.msra.mxu0 %v2602_v28 }
 0x60f   :  { %2028 = vmatprep.subr.bf16.mxu0 %v2441_v0 }
 0x612   :  { %2029 = vmatpush3.bf16.msra.mxu0 %v2614_v31 }
 0x613   :  { %2054 = vmatprep.subr.bf16.mxu0 %v2441_v0 }
 0x6b5   :  { %v670_v35 = vpop.f32.mrf.mxu0 }
 0x6b6   :  { %v676_v36 = vadd.f32 %v670_v35, %v227_v34 }
 0x6b7   :  { %v1977_v37 = vpop.f32.mrf.mxu0 }
 0x6b8   :  { %2365 = vtanh.f32 %v676_v36 }
 0x6b9   :  { %v673_v38 = vpop.f32.mrf.mxu0 }
 0x6bb   :  { %v1978_v39 = vpop.f32.mrf.mxu0 }
 0x6c5   :  { %v2366_v40 = vpop.eup %2365 }
 0x6c6   :  { %2012 = vmatmul.mubr.f32.vlgmr.msra.gmra.mxu1 %v2366_v40  ;;  %v754_v41 = vpack.c.bf16 %v2366_v40, %v2366_v40 }
 0x6c7   :  { %2035 = vmatpush3.bf16.msra.mxu1 %v2510_v4  ;;  %2050 = vmatprep.mubr.msk.bf16.mxu1 %vm2442_vm0, %v2441_v0 }
 0x6c8   :  { %2031 = vmatmul.mubr.bf16.vlgmr.msra.gmra.mxu0 %v754_v41  ;;  %2036 = vmatprep.subr.bf16.mxu1 %v2441_v0 }
 0x6c9   :  { %2055 = vmatpush3.bf16.msra.mxu0 %v2510_v4  ;;  %2070 = vmatprep.mubr.msk.bf16.mxu0 %vm2442_vm0, %v2441_v0 }
 0x6ca   :  { %2056 = vmatprep.subr.bf16.mxu0 %v2441_v0 }
 0x6cb   :  { %2037 = vmatpush3.bf16.msra.mxu1 %v2516_v6 }
 0x6cc   :  { %2038 = vmatprep.subr.bf16.mxu1 %v2441_v0 }
 0x6cd   :  { %2057 = vmatpush3.bf16.msra.mxu0 %v2516_v6 }
 0x6ce   :  { %2058 = vmatprep.subr.bf16.mxu0 %v2441_v0 }
 0x6cf   :  { %2039 = vmatpush3.bf16.msra.mxu1 %v2539_v13 }
 0x6d0   :  { %2040 = vmatprep.subr.bf16.mxu1 %v2441_v0 }
 0x6d1   :  { %2059 = vmatpush3.bf16.msra.mxu0 %v2539_v13 }
 0x6d2   :  { %2060 = vmatprep.subr.bf16.mxu0 %v2441_v0 }
 0x6d3   :  { %2041 = vmatpush3.bf16.msra.mxu1 %v2560_v18 }
 0x6d4   :  { %2042 = vmatprep.subr.bf16.mxu1 %v2441_v0 }
 0x6d5   :  { %2061 = vmatpush3.bf16.msra.mxu0 %v2560_v18 }
 0x6d6   :  { %2062 = vmatprep.subr.bf16.mxu0 %v2441_v0 }
 0x6d7   :  { %2043 = vmatpush3.bf16.msra.mxu1 %v2577_v22 }
 0x6d8   :  { %2044 = vmatprep.subr.bf16.mxu1 %v2441_v0 }
 0x6d9   :  { %2063 = vmatpush3.bf16.msra.mxu0 %v2577_v22 }
 0x6da   :  { %2064 = vmatprep.subr.bf16.mxu0 %v2441_v0 }
 0x6db   :  { %2045 = vmatpush3.bf16.msra.mxu1 %v2590_v25 }
 0x6dc   :  { %2046 = vmatprep.subr.bf16.mxu1 %v2441_v0 }
 0x6dd   :  { %2065 = vmatpush3.bf16.msra.mxu0 %v2590_v25 }
 0x6de   :  { %2066 = vmatprep.subr.bf16.mxu0 %v2441_v0 }
 0x6df   :  { %2047 = vmatpush3.bf16.msra.mxu1 %v2602_v28 }
 0x6e0   :  { %2048 = vmatprep.subr.bf16.mxu1 %v2441_v0 }
 0x6e1   :  { %2067 = vmatpush3.bf16.msra.mxu0 %v2602_v28 }
 0x6e2   :  { %2068 = vmatprep.subr.bf16.mxu0 %v2441_v0 }
 0x6e3   :  { %2049 = vmatpush3.bf16.msra.mxu1 %v2614_v31 }
 0x6e4   :  { %2074 = vmatprep.subr.bf16.mxu1 %v2441_v0 }
 0x6e5   :  { %2069 = vmatpush3.bf16.msra.mxu0 %v2614_v31 }
 0x6e6   :  { %2094 = vmatprep.subr.bf16.mxu0 %v2441_v0 }
 0x786   :  { %v2988_v58 = vpop.f32.mrf.mxu1 }
 0x788   :  { %v2013_v43 = vpop.f32.mrf.mxu1  ;;  %v789_v45 = vpop.f32.mrf.mxu0 }
 0x789   :  { %v795_v46 = vadd.f32 %v789_v45, %v232_v42 }
 0x78a   :  { %v2032_v47 = vpop.f32.mrf.mxu0 }
 0x78b   :  { %2367 = vtanh.f32 %v795_v46 }
 0x78c   :  { %v792_v48 = vpop.f32.mrf.mxu0 }
 0x78e   :  { %v2033_v49 = vpop.f32.mrf.mxu0 }
 0x798   :  { %v2368_v50 = vpop.eup %2367 }
 0x799   :  { %v797_v51 = vpack.c.bf16 %v2368_v50, %v2368_v50 }
 0x79b   :  { %2051 = vmatmul.mubr.bf16.vlgmr.msra.gmra.mxu1 %v797_v51 }
 0x79c   :  { %2075 = vmatpush3.bf16.msra.mxu1 %v2510_v4  ;;  %2090 = vmatprep.mubr.msk.bf16.mxu1 %vm2442_vm0, %v2441_v0 }
 0x79d   :  { %2076 = vmatprep.subr.bf16.mxu1 %v2441_v0 }
 0x7a0   :  { %2077 = vmatpush3.bf16.msra.mxu1 %v2516_v6 }
 0x7a1   :  { %2078 = vmatprep.subr.bf16.mxu1 %v2441_v0 }
 0x7a4   :  { %2079 = vmatpush3.bf16.msra.mxu1 %v2539_v13 }
 0x7a5   :  { %2080 = vmatprep.subr.bf16.mxu1 %v2441_v0 }
 0x7a8   :  { %2081 = vmatpush3.bf16.msra.mxu1 %v2560_v18 }
 0x7a9   :  { %2082 = vmatprep.subr.bf16.mxu1 %v2441_v0 }
 0x7ac   :  { %2083 = vmatpush3.bf16.msra.mxu1 %v2577_v22 }
 0x7ad   :  { %2084 = vmatprep.subr.bf16.mxu1 %v2441_v0 }
 0x7b0   :  { %2085 = vmatpush3.bf16.msra.mxu1 %v2590_v25 }
 0x7b1   :  { %2086 = vmatprep.subr.bf16.mxu1 %v2441_v0 }
 0x7b4   :  { %2087 = vmatpush3.bf16.msra.mxu1 %v2602_v28 }
 0x7b5   :  { %2088 = vmatprep.subr.bf16.mxu1 %v2441_v0 }
 0x7b8   :  { %2089 = vmatpush3.bf16.msra.mxu1 %v2614_v31 }
 0x7b9   :  { %2114 = vmatprep.subr.bf16.mxu1 %v2441_v0 }
 0x85b   :  { %v832_v52 = vpop.f32.mrf.mxu1 }
 0x85c   :  { %v838_v53 = vadd.f32 %v832_v52, %v237_v61  ;;  %v301_v52 = vld [vmem:[#allocation2 + $0x38] sm:$0xff] }
 0x85d   :  { %v2052_v54 = vpop.f32.mrf.mxu1 }
 0x85e   :  { %2369 = vtanh.f32 %v838_v53  ;;  %v298_v54 = vld [vmem:[#allocation2 + $0x20] sm:$0xff] }
 0x85f   :  { %v835_v11 = vpop.f32.mrf.mxu1 }
 0x860   :  { %v299_v11 = vld [vmem:[#allocation2 + $0x28] sm:$0xff] }
 0x861   :  { %v2053_v12 = vpop.f32.mrf.mxu1 }
 0x862   :  { %v3150_v12 = vpack.c.bf16 %v299_v11, %v298_v54 }
 0x86b   :  { %v2370_v14 = vpop.eup %2369 }
 0x86c   :  { %v840_v15 = vpack.c.bf16 %v2370_v14, %v2370_v14  ;;  %v296_v14 = vld [vmem:[#allocation2 + $0x10] sm:$0xff] }
 0x86e   :  { %2071 = vmatmul.mubr.bf16.vlgmr.msra.gmra.mxu0 %v840_v15  ;;  %v297_v15 = vld [vmem:[#allocation2 + $0x18] sm:$0xff] }
 0x86f   :  { %2095 = vmatpush3.bf16.msra.mxu0 %v2510_v4  ;;  %2110 = vmatprep.mubr.msk.bf16.mxu0 %vm2442_vm0, %v2441_v0 }
 0x870   :  { %2096 = vmatprep.subr.bf16.mxu0 %v2441_v0 }
 0x873   :  { %2097 = vmatpush3.bf16.msra.mxu0 %v2516_v6 }
 0x874   :  { %2098 = vmatprep.subr.bf16.mxu0 %v2441_v0 }
 0x877   :  { %2099 = vmatpush3.bf16.msra.mxu0 %v2539_v13 }
 0x878   :  { %2100 = vmatprep.subr.bf16.mxu0 %v2441_v0 }
 0x87b   :  { %2101 = vmatpush3.bf16.msra.mxu0 %v2560_v18 }
 0x87c   :  { %2102 = vmatprep.subr.bf16.mxu0 %v2441_v0 }
 0x87f   :  { %2103 = vmatpush3.bf16.msra.mxu0 %v2577_v22 }
 0x880   :  { %2104 = vmatprep.subr.bf16.mxu0 %v2441_v0 }
 0x883   :  { %2105 = vmatpush3.bf16.msra.mxu0 %v2590_v25 }
 0x884   :  { %2106 = vmatprep.subr.bf16.mxu0 %v2441_v0 }
 0x887   :  { %2107 = vmatpush3.bf16.msra.mxu0 %v2602_v28 }
 0x888   :  { %2108 = vmatprep.subr.bf16.mxu0 %v2441_v0 }
 0x88b   :  { %2109 = vmatpush3.bf16.msra.mxu0 %v2614_v31 }
 0x88c   :  { %2134 = vmatprep.subr.bf16.mxu0 %v2441_v0 }
 0x92e   :  { %v875_v16 = vpop.f32.mrf.mxu0 }
 0x92f   :  { %v881_v17 = vadd.f32 %v875_v16, %v242_v60  ;;  %v294_v60 = vld [vmem:[#allocation2] sm:$0xff]  ;;  %v3154_v16 = vpack.c.bf16 %v297_v15, %v296_v14 }
 0x930   :  { %v2072_v19 = vpop.f32.mrf.mxu0 }
 0x931   :  { %2371 = vtanh.f32 %v881_v17  ;;  %v295_v17 = vld [vmem:[#allocation2 + $0x8] sm:$0xff] }
 0x932   :  { %v878_v20 = vpop.f32.mrf.mxu0  ;;  %v3157_v19 = vpack.c.bf16 %v295_v17, %v294_v60  ;;  %v1414_v17 = vld [vmem:[%s3331_s7 + $0x40] sm:$0xff] }
 0x934   :  { %v2073_v34 = vpop.f32.mrf.mxu0 }
 0x93e   :  { %v2372_v35 = vpop.eup %2371 }
 0x93f   :  { %v883_v36 = vpack.c.bf16 %v2372_v35, %v2372_v35 }
 0x941   :  { %2091 = vmatmul.mubr.bf16.vlgmr.msra.gmra.mxu1 %v883_v36 }
 0x942   :  { %2115 = vmatpush3.bf16.msra.mxu1 %v2510_v4  ;;  %2130 = vmatprep.mubr.msk.bf16.mxu1 %vm2442_vm0, %v2441_v0 }
 0x943   :  { %2116 = vmatprep.subr.bf16.mxu1 %v2441_v0 }
 0x946   :  { %2117 = vmatpush3.bf16.msra.mxu1 %v2516_v6 }
 0x947   :  { %2118 = vmatprep.subr.bf16.mxu1 %v2441_v0 }
 0x94a   :  { %2119 = vmatpush3.bf16.msra.mxu1 %v2539_v13 }
 0x94b   :  { %2120 = vmatprep.subr.bf16.mxu1 %v2441_v0 }
 0x94e   :  { %2121 = vmatpush3.bf16.msra.mxu1 %v2560_v18 }
 0x94f   :  { %2122 = vmatprep.subr.bf16.mxu1 %v2441_v0 }
 0x952   :  { %2123 = vmatpush3.bf16.msra.mxu1 %v2577_v22 }
 0x953   :  { %2124 = vmatprep.subr.bf16.mxu1 %v2441_v0 }
 0x956   :  { %2125 = vmatpush3.bf16.msra.mxu1 %v2590_v25 }
 0x957   :  { %2126 = vmatprep.subr.bf16.mxu1 %v2441_v0 }
 0x95a   :  { %2127 = vmatpush3.bf16.msra.mxu1 %v2602_v28 }
 0x95b   :  { %2128 = vmatprep.subr.bf16.mxu1 %v2441_v0 }
 0x95e   :  { %2129 = vmatpush3.bf16.msra.mxu1 %v2614_v31 }
 0x95f   :  { %2154 = vmatprep.subr.bf16.mxu1 %v2441_v0 }
 0xa01   :  { %v918_v37 = vpop.f32.mrf.mxu1 }
 0xa02   :  { %v924_v38 = vadd.f32 %v918_v37, %v247_v63 }
 0xa03   :  { %v2092_v39 = vpop.f32.mrf.mxu1 }
 0xa04   :  { %2373 = vtanh.f32 %v924_v38 }
 0xa05   :  { %v921_v40 = vpop.f32.mrf.mxu1 }
 0xa07   :  { %v2093_v41 = vpop.f32.mrf.mxu1 }
 0xa11   :  { %v2374_v42 = vpop.eup %2373 }
 0xa12   :  { %v926_v43 = vpack.c.bf16 %v2374_v42, %v2374_v42  ;;  %v1534_v42 = vld [vmem:[%s3330_s6] ss:$0 sm:$0xff] }
 0xa14   :  { %2111 = vmatmul.mubr.bf16.vlgmr.msra.gmra.mxu0 %v926_v43  ;;  %v751_v43 = vadd.f32 %v1534_v42, %v2988_v58 }
 0xa15   :  { %2135 = vmatpush3.bf16.msra.mxu0 %v2510_v4  ;;  %2150 = vmatprep.mubr.msk.bf16.mxu0 %vm2442_vm0, %v2441_v0 }
 0xa16   :  { %2136 = vmatprep.subr.bf16.mxu0 %v2441_v0 }
 0xa19   :  { %2137 = vmatpush3.bf16.msra.mxu0 %v2516_v6 }
 0xa1a   :  { %2138 = vmatprep.subr.bf16.mxu0 %v2441_v0 }
 0xa1d   :  { %2139 = vmatpush3.bf16.msra.mxu0 %v2539_v13 }
 0xa1e   :  { %2140 = vmatprep.subr.bf16.mxu0 %v2441_v0 }
 0xa21   :  { %2141 = vmatpush3.bf16.msra.mxu0 %v2560_v18 }
 0xa22   :  { %2142 = vmatprep.subr.bf16.mxu0 %v2441_v0 }
 0xa25   :  { %2143 = vmatpush3.bf16.msra.mxu0 %v2577_v22 }
 0xa26   :  { %2144 = vmatprep.subr.bf16.mxu0 %v2441_v0 }
 0xa29   :  { %2145 = vmatpush3.bf16.msra.mxu0 %v2590_v25 }
 0xa2a   :  { %2146 = vmatprep.subr.bf16.mxu0 %v2441_v0 }
 0xa2d   :  { %2147 = vmatpush3.bf16.msra.mxu0 %v2602_v28 }
 0xa2e   :  { %2148 = vmatprep.subr.bf16.mxu0 %v2441_v0 }
 0xa31   :  { %2149 = vmatpush3.bf16.msra.mxu0 %v2614_v31 }
 0xa32   :  { %2174 = vmatprep.subr.mxu0 %v2441_v0 }
 0xad4   :  { %v961_v45 = vpop.f32.mrf.mxu0 }
 0xad5   :  { %v967_v46 = vadd.f32 %v961_v45, %v252_v62 }
 0xad6   :  { %v2112_v47 = vpop.f32.mrf.mxu0 }
 0xad7   :  { %2375 = vtanh.f32 %v967_v46  ;;  %v1174_v46 = vrot.slane %v751_v43, 1 }
 0xad8   :  { %v964_v48 = vpop.f32.mrf.mxu0 }
 0xad9   :  { %v1177_v48 = vrot.slane %v751_v43, 2 }
 0xada   :  { %v2113_v49 = vpop.f32.mrf.mxu0 }
 0xadb   :  { %v1182_v49 = vrot.slane %v751_v43, 3 }
 0xae4   :  { %v2376_v50 = vpop.eup %2375 }
 0xae5   :  { %v969_v51 = vpack.c.bf16 %v2376_v50, %v2376_v50 }
 0xae7   :  { %2131 = vmatmul.mubr.bf16.vlgmr.msra.gmra.mxu1 %v969_v51 }
 0xae8   :  { %2155 = vmatpush3.bf16.msra.mxu1 %v2510_v4  ;;  %2170 = vmatprep.mubr.msk.bf16.mxu1 %vm2442_vm0, %v2441_v0  ;;  %v257_v4 = vadd.f32 %v2728_v1, %v2689_v44 }
 0xae9   :  { %2156 = vmatprep.subr.bf16.mxu1 %v2441_v0 }
 0xaec   :  { %2157 = vmatpush3.bf16.msra.mxu1 %v2516_v6 }
 0xaed   :  { %2158 = vmatprep.subr.bf16.mxu1 %v2441_v0 }
 0xaf0   :  { %2159 = vmatpush3.bf16.msra.mxu1 %v2539_v13 }
 0xaf1   :  { %2160 = vmatprep.subr.bf16.mxu1 %v2441_v0 }
 0xaf4   :  { %2161 = vmatpush3.bf16.msra.mxu1 %v2560_v18 }
 0xaf5   :  { %2162 = vmatprep.subr.bf16.mxu1 %v2441_v0 }
 0xaf8   :  { %2163 = vmatpush3.bf16.msra.mxu1 %v2577_v22 }
 0xaf9   :  { %2164 = vmatprep.subr.bf16.mxu1 %v2441_v0 }
 0xafc   :  { %2165 = vmatpush3.bf16.msra.mxu1 %v2590_v25 }
 0xafd   :  { %2166 = vmatprep.subr.bf16.mxu1 %v2441_v0 }
 0xb00   :  { %2167 = vmatpush3.bf16.msra.mxu1 %v2602_v28  ;;  %v262_v28 = vadd.f32 %v2689_v44, %v2734_v5  ;;  %v304_v44 = vld [vmem:[#allocation2 + $0x50] sm:$0xff]  ;;  %v305_v5 = vld [vmem:[#allocation2 + $0x58] sm:$0xff] }
 0xb01   :  { %2168 = vmatprep.subr.bf16.mxu1 %v2441_v0 }
 0xb04   :  { %2169 = vmatpush3.bf16.msra.mxu1 %v2614_v31 }
 0xb05   :  { %2209 = vmatprep.subr.bf16.mxu1 %v2441_v0 }
 0xba7   :  { %v1004_v6 = vpop.f32.mrf.mxu1 }
 0xba8   :  { %v1010_v13 = vadd.f32 %v1004_v6, %v257_v4 }
 0xba9   :  { %v2132_v18 = vpop.f32.mrf.mxu1 }
 0xbaa   :  { %2377 = vtanh.f32 %v1010_v13  ;;  %v1187_v13 = vrot.slane %v751_v43, 4 }
 0xbab   :  { %v1007_v22 = vpop.f32.mrf.mxu1 }
 0xbad   :  { %v2133_v2 = vpop.f32.mrf.mxu1 }
 0xbb7   :  { %v2378_v25 = vpop.eup %2377 }
 0xbb8   :  { %v1012_v61 = vpack.c.bf16 %v2378_v25, %v2378_v25 }
 0xbba   :  { %2151 = vmatmul.mubr.bf16.vlgmr.msra.gmra.mxu0 %v1012_v61 }
 0xbbb   :  { %2175 = vmatpush3.msra.mxu0 %v2821_v55  ;;  %2206 = vmatprep.mubr.msk.f32.mxu0 %vm2442_vm0, %v2441_v0 }
 0xbbc   :  { %2176 = vmatprep.subr.mxu0 %v2441_v0 }
 0xbbd   :  { %2177 = vmatpush3.msra.mxu0 %v2826_v56 }
 0xbbe   :  { %2178 = vmatprep.subr.mxu0 %v2441_v0 }
 0xbbf   :  { %2179 = vmatpush3.msra.mxu0 %v2833_v57 }
 0xbc0   :  { %2180 = vmatprep.subr.mxu0 %v2441_v0 }
 0xbc1   :  { %2181 = vmatpush3.msra.mxu0 %v2840_v7  ;;  %v308_v7 = vld [vmem:[#allocation2 + $0x70] sm:$0xff] }
 0xbc2   :  { %2182 = vmatprep.subr.mxu0 %v2441_v0 }
 0xbc3   :  { %2183 = vmatpush3.msra.mxu0 %v2847_v8  ;;  %v309_v8 = vld [vmem:[#allocation2 + $0x78] sm:$0xff] }
 0xbc4   :  { %2184 = vmatprep.subr.mxu0 %v2441_v0 }
 0xbc5   :  { %2185 = vmatpush3.msra.mxu0 %v2854_v9 }
 0xbc6   :  { %2186 = vmatprep.subr.mxu0 %v2441_v0 }
 0xbc7   :  { %2187 = vmatpush3.msra.mxu0 %v2861_v10  ;;  %v3128_v10 = vpack.c.bf16 %v309_v8, %v308_v7 }
 0xbc8   :  { %2188 = vmatprep.subr.mxu0 %v2441_v0 }
 0xbc9   :  { %2189 = vmatpush3.msra.mxu0 %v2890_v59 }
 0xbca   :  { %2190 = vmatprep.subr.mxu0 %v2441_v0 }
 0xbcb   :  { %2191 = vmatpush3.msra.mxu0 %v2897_v21  ;;  %v306_v21 = vld [vmem:[#allocation2 + $0x60] sm:$0xff] }
 0xbcc   :  { %2192 = vmatprep.subr.mxu0 %v2441_v0 }
 0xbcd   :  { %2193 = vmatpush3.msra.mxu0 %v2904_v23  ;;  %v307_v23 = vld [vmem:[#allocation2 + $0x68] sm:$0xff] }
 0xbce   :  { %2194 = vmatprep.subr.mxu0 %v2441_v0 }
 0xbcf   :  { %2195 = vmatpush3.msra.mxu0 %v2911_v24  ;;  %v3131_v24 = vpack.c.bf16 %v307_v23, %v306_v21 }
 0xbd0   :  { %2196 = vmatprep.subr.mxu0 %v2441_v0 }
 0xbd1   :  { %2197 = vmatpush3.msra.mxu0 %v2917_v26  ;;  %v3137_v26 = vpack.c.bf16 %v305_v5, %v304_v44 }
 0xbd2   :  { %2198 = vmatprep.subr.mxu0 %v2441_v0 }
 0xbd3   :  { %2199 = vmatpush3.msra.mxu0 %v2923_v27  ;;  %v302_v27 = vld [vmem:[#allocation2 + $0x40] sm:$0xff] }
 0xbd4   :  { %2200 = vmatprep.subr.mxu0 %v2441_v0 }
 0xbd5   :  { %2201 = vmatpush3.msra.mxu0 %v2930_v29  ;;  %v303_v29 = vld [vmem:[#allocation2 + $0x48] sm:$0xff] }
 0xbd6   :  { %2202 = vmatprep.subr.mxu0 %v2441_v0 }
 0xbd7   :  { %2203 = vmatpush3.msra.mxu0 %v2937_v30  ;;  %v3141_v30 = vpack.c.bf16 %v303_v29, %v302_v27  ;;  %v1420_v27 = vld [vmem:[%s3331_s7 + $0x70] sm:$0xff]  ;;  %v1419_v29 = vld [vmem:[%s3331_s7 + $0x68] sm:$0xff] }
 0xbd8   :  { %2204 = vmatprep.subr.mxu0 %v2441_v0 }
 0xbd9   :  { %2205 = vmatpush3.msra.mxu0 %v2944_v33  ;;  %v300_v33 = vld [vmem:[#allocation2 + $0x30] sm:$0xff] }
 0xbda   :  { %2229 = vmatprep.subr.bf16.mxu0 %v2441_v0  ;;  %v3146_v53 = vpack.c.bf16 %v301_v52, %v300_v33  ;;  %v1417_v33 = vld [vmem:[%s3331_s7 + $0x58] sm:$0xff]  ;;  %v1416_v52 = vld [vmem:[%s3331_s7 + $0x50] sm:$0xff] }
 0xc7a   :  { %v1047_v31 = vpop.f32.mrf.mxu0 }
 0xc7b   :  { %v1053_v1 = vadd.f32 %v1047_v31, %v262_v28 }
 0xc7c   :  { %v2152_v55 = vpop.f32.mrf.mxu0 }
 0xc7d   :  { %2379 = vtanh.f32 %v1053_v1 }
 0xc7e   :  { %v1050_v56 = vpop.f32.mrf.mxu0 }
 0xc80   :  { %v2153_v57 = vpop.f32.mrf.mxu0 }
 0xc8a   :  { %v2380_v9 = vpop.eup %2379 }
 0xc8b   :  { %v1055_v59 = vpack.c.bf16 %v2380_v9, %v2380_v9 }
 0xc8d   :  { %2171 = vmatmul.mubr.bf16.vlgmr.msra.gmra.mxu1 %v1055_v59 }
 0xc8e   :  { %2210 = vmatpush3.bf16.msra.mxu1 %v3128_v10  ;;  %2225 = vmatprep.mubr.msk.bf16.mxu1 %vm2442_vm0, %v2441_v0 }
 0xc8f   :  { %2211 = vmatprep.subr.bf16.mxu1 %v2441_v0 }
 0xc92   :  { %2212 = vmatpush3.bf16.msra.mxu1 %v3131_v24 }
 0xc93   :  { %2213 = vmatprep.subr.bf16.mxu1 %v2441_v0 }
 0xc96   :  { %2214 = vmatpush3.bf16.msra.mxu1 %v3137_v26 }
 0xc97   :  { %2215 = vmatprep.subr.bf16.mxu1 %v2441_v0 }
 0xc9a   :  { %2216 = vmatpush3.bf16.msra.mxu1 %v3141_v30 }
 0xc9b   :  { %2217 = vmatprep.subr.bf16.mxu1 %v2441_v0 }
 0xc9e   :  { %2218 = vmatpush3.bf16.msra.mxu1 %v3146_v53 }
 0xc9f   :  { %2219 = vmatprep.subr.bf16.mxu1 %v2441_v0 }
 0xca2   :  { %2220 = vmatpush3.bf16.msra.mxu1 %v3150_v12 }
 0xca3   :  { %2221 = vmatprep.subr.bf16.mxu1 %v2441_v0 }
 0xca6   :  { %2222 = vmatpush3.bf16.msra.mxu1 %v3154_v16 }
 0xca7   :  { %2223 = vmatprep.subr.bf16.mxu1 %v2441_v0 }
 0xcaa   :  { %2224 = vmatpush3.bf16.msra.mxu1 %v3157_v19 }
 0xcab   :  { %2249 = vmatprep.subr.bf16.mxu1 %v2441_v0 }
 0xcad   :  { %2226 = vmatmul.mubr.bf16.vlgmr.msra.gmra.mxu1 %v2443_v32  ;;  %v2393_v32 = vld [vmem:[%s3327_s3] ss:$0 sm:$0xff] }
 0xcae   :  { %2250 = vmatpush3.bf16.msra.mxu1 %v3128_v10  ;;  %2265 = vmatprep.mubr.msk.bf16.mxu1 %vm2442_vm0, %v2441_v0  ;;  %v267_v20 = vadd.f32 %v2393_v32, %v2732_v3  ;;  %v1412_v32 = vld [vmem:[%s3331_s7 + $0x30] sm:$0xff] }
 0xcaf   :  { %2251 = vmatprep.subr.bf16.mxu1 %v2441_v0 }
 0xcb2   :  { %2252 = vmatpush3.bf16.msra.mxu1 %v3131_v24 }
 0xcb3   :  { %2253 = vmatprep.subr.bf16.mxu1 %v2441_v0 }
 0xcb6   :  { %2254 = vmatpush3.bf16.msra.mxu1 %v3137_v26 }
 0xcb7   :  { %2255 = vmatprep.subr.bf16.mxu1 %v2441_v0 }
 0xcba   :  { %2256 = vmatpush3.bf16.msra.mxu1 %v3141_v30 }
 0xcbb   :  { %2257 = vmatprep.subr.bf16.mxu1 %v2441_v0 }
 0xcbe   :  { %2258 = vmatpush3.bf16.msra.mxu1 %v3146_v53 }
 0xcbf   :  { %2259 = vmatprep.subr.bf16.mxu1 %v2441_v0 }
 0xcc2   :  { %2260 = vmatpush3.bf16.msra.mxu1 %v3150_v12 }
 0xcc3   :  { %2261 = vmatprep.subr.bf16.mxu1 %v2441_v0 }
 0xcc6   :  { %2262 = vmatpush3.bf16.msra.mxu1 %v3154_v16 }
 0xcc7   :  { %2263 = vmatprep.subr.bf16.mxu1 %v2441_v0 }
 0xcca   :  { %2264 = vmatpush3.bf16.msra.mxu1 %v3157_v19 }
 0xccb   :  { %2289 = vmatprep.subr.bf16.mxu1 %v2441_v0 }
 0xd4d   :  { %v1090_v34 = vpop.f32.mrf.mxu1 }
 0xd4e   :  { %v1096_v35 = vadd.f32 %v1090_v34, %v267_v20  ;;  %v1411_v20 = vld [vmem:[%s3331_s7 + $0x28] sm:$0xff]  ;;  %v1410_v34 = vld [vmem:[%s3331_s7 + $0x20] sm:$0xff] }
 0xd4f   :  { %v2172_v36 = vpop.f32.mrf.mxu1 }
 0xd50   :  { %2381 = vtanh.f32 %v1096_v35  ;;  %v1409_v35 = vld [vmem:[%s3331_s7 + $0x18] sm:$0xff]  ;;  %v1408_v36 = vld [vmem:[%s3331_s7 + $0x10] sm:$0xff] }
 0xd51   :  { %v1093_v63 = vpop.f32.mrf.mxu1 }
 0xd52   :  { %v1407_v63 = vld [vmem:[%s3331_s7 + $0x8] sm:$0xff] }
 0xd53   :  { %v2173_v37 = vpop.f32.mrf.mxu1 }
 0xd54   :  { %v1406_v37 = vld [vmem:[%s3331_s7] sm:$0xff] }
 0xd5d   :  { %v2382_v38 = vpop.eup %2381 }
 0xd5e   :  { %2207 = vmatmul.mubr.f32.vlgmr.msra.gmra.mxu0 %v2382_v38 }
 0xd5f   :  { %2230 = vmatpush3.bf16.msra.mxu0 %v3128_v10  ;;  %2245 = vmatprep.mubr.msk.bf16.mxu0 %vm2442_vm0, %v2441_v0 }
 0xd60   :  { %2231 = vmatprep.subr.bf16.mxu0 %v2441_v0 }
 0xd63   :  { %2232 = vmatpush3.bf16.msra.mxu0 %v3131_v24 }
 0xd64   :  { %2233 = vmatprep.subr.bf16.mxu0 %v2441_v0 }
 0xd67   :  { %2234 = vmatpush3.bf16.msra.mxu0 %v3137_v26 }
 0xd68   :  { %2235 = vmatprep.subr.bf16.mxu0 %v2441_v0 }
 0xd6b   :  { %2236 = vmatpush3.bf16.msra.mxu0 %v3141_v30 }
 0xd6c   :  { %2237 = vmatprep.subr.bf16.mxu0 %v2441_v0 }
 0xd6d   :  { %v1226_v3 = vpop.f32.mrf.mxu1 }
 0xd6f   :  { %2238 = vmatpush3.bf16.msra.mxu0 %v3146_v53  ;;  %v2227_v39 = vpop.f32.mrf.mxu1 }
 0xd70   :  { %2239 = vmatprep.subr.bf16.mxu0 %v2441_v0 }
 0xd71   :  { %v1229_v40 = vpop.f32.mrf.mxu1 }
 0xd73   :  { %2240 = vmatpush3.bf16.msra.mxu0 %v3150_v12  ;;  %v2228_v41 = vpop.f32.mrf.mxu1 }
 0xd74   :  { %2241 = vmatprep.subr.bf16.mxu0 %v2441_v0 }
 0xd77   :  { %2242 = vmatpush3.bf16.msra.mxu0 %v3154_v16 }
 0xd78   :  { %2243 = vmatprep.subr.bf16.mxu0 %v2441_v0 }
 0xd7b   :  { %2244 = vmatpush3.bf16.msra.mxu0 %v3157_v19 }
 0xd7c   :  { %2269 = vmatprep.subr.bf16.mxu0 %v2441_v0 }
 0xe1e   :  { %v1164_v62 = vpop.f32.mrf.mxu0 }
 0xe1f   :  { %v1165_v45 = vadd.f32 %v1534_v42, %v1164_v62 }
 0xe20   :  { %v2208_v47 = vpop.f32.mrf.mxu0 }
 0xe21   :  { %v1169_v50 = vrot.slane %v1165_v45, 7  ;;  %v1176_v51 = vsel %vm1171_vm3, %v1174_v46, %v1165_v45  ;;  %v1179_v4 = vrot.slane %v1165_v45, 1  ;;  %v1184_v6 = vrot.slane %v1165_v45, 2 }
 0xe22   :  { %v1189_v18 = vrot.slane %v1165_v45, 3 }
 0xe23   :  { %v1172_v22 = vsel %vm1171_vm3, %v751_v43, %v1169_v50  ;;  %v1181_v2 = vsel %vm1171_vm3, %v1177_v48, %v1179_v4  ;;  %v3211_v58 = vsel %vm1171_vm3, %v1182_v49, %v1184_v6  ;;  %v1535_v43 = vld [vmem:[%s3332_s8] ss:$0 sm:$0xff] }
 0xe24   :  { %v1232_v25 = vadd.f32 %v1226_v3, %v1172_v22  ;;  %v3214_v61 = vsel %vm1171_vm3, %v1187_v13, %v1189_v18 }
 0xe26   :  { %2383 = vtanh.f32 %v1232_v25 }
 0xe33   :  { %v2384_v28 = vpop.eup %2383 }
 0xe34   :  { %v1234_v31 = vpack.c.bf16 %v2384_v28, %v2384_v28 }
 0xe36   :  { %2246 = vmatmul.mubr.bf16.vlgmr.msra.gmra.mxu0 %v1234_v31 }
 0xe37   :  { %2270 = vmatpush3.bf16.msra.mxu0 %v3128_v10  ;;  %2285 = vmatprep.mubr.msk.bf16.mxu0 %vm2442_vm0, %v2441_v0 }
 0xe38   :  { %2271 = vmatprep.subr.bf16.mxu0 %v2441_v0 }
 0xe3b   :  { %2272 = vmatpush3.bf16.msra.mxu0 %v3131_v24 }
 0xe3c   :  { %2273 = vmatprep.subr.bf16.mxu0 %v2441_v0 }
 0xe3f   :  { %2274 = vmatpush3.bf16.msra.mxu0 %v3137_v26 }
 0xe40   :  { %2275 = vmatprep.subr.bf16.mxu0 %v2441_v0 }
 0xe43   :  { %2276 = vmatpush3.bf16.msra.mxu0 %v3141_v30 }
 0xe44   :  { %2277 = vmatprep.subr.bf16.mxu0 %v2441_v0 }
 0xe47   :  { %2278 = vmatpush3.bf16.msra.mxu0 %v3146_v53 }
 0xe48   :  { %2279 = vmatprep.subr.bf16.mxu0 %v2441_v0 }
 0xe4b   :  { %2280 = vmatpush3.bf16.msra.mxu0 %v3150_v12 }
 0xe4c   :  { %2281 = vmatprep.subr.bf16.mxu0 %v2441_v0 }
 0xe4f   :  { %2282 = vmatpush3.bf16.msra.mxu0 %v3154_v16 }
 0xe50   :  { %2283 = vmatprep.subr.bf16.mxu0 %v2441_v0 }
 0xe53   :  { %2284 = vmatpush3.bf16.msra.mxu0 %v3157_v19 }
 0xe54   :  { %2309 = vmatprep.subr.mxu0 %v2441_v0 }
 0xef6   :  { %v1269_v1 = vpop.f32.mrf.mxu0 }
 0xef7   :  { %v1275_v55 = vadd.f32 %v1269_v1, %v1176_v51 }
 0xef8   :  { %v2247_v56 = vpop.f32.mrf.mxu0 }
 0xef9   :  { %2385 = vtanh.f32 %v1275_v55 }
 0xefa   :  { %v1272_v57 = vpop.f32.mrf.mxu0 }
 0xefc   :  { %v2248_v7 = vpop.f32.mrf.mxu0 }
 0xf06   :  { %v2386_v8 = vpop.eup %2385 }
 0xf07   :  { %v1277_v9 = vpack.c.bf16 %v2386_v8, %v2386_v8 }
 0xf09   :  { %2266 = vmatmul.mubr.bf16.vlgmr.msra.gmra.mxu1 %v1277_v9 }
 0xf0a   :  { %2290 = vmatpush3.bf16.msra.mxu1 %v3128_v10  ;;  %2305 = vmatprep.mubr.msk.bf16.mxu1 %vm2442_vm0, %v2441_v0 }
 0xf0b   :  { %2291 = vmatprep.subr.bf16.mxu1 %v2441_v0 }
 0xf0e   :  { %2292 = vmatpush3.bf16.msra.mxu1 %v3131_v24 }
 0xf0f   :  { %2293 = vmatprep.subr.bf16.mxu1 %v2441_v0 }
 0xf12   :  { %2294 = vmatpush3.bf16.msra.mxu1 %v3137_v26  ;;  %v1421_v26 = vld [vmem:[%s3331_s7 + $0x78] sm:$0xff] }
 0xf13   :  { %2295 = vmatprep.subr.bf16.mxu1 %v2441_v0 }
 0xf16   :  { %2296 = vmatpush3.bf16.msra.mxu1 %v3141_v30  ;;  %v1418_v30 = vld [vmem:[%s3331_s7 + $0x60] sm:$0xff] }
 0xf17   :  { %2297 = vmatprep.subr.bf16.mxu1 %v2441_v0 }
 0xf1a   :  { %2298 = vmatpush3.bf16.msra.mxu1 %v3146_v53  ;;  %v1415_v53 = vld [vmem:[%s3331_s7 + $0x48] sm:$0xff] }
 0xf1b   :  { %2299 = vmatprep.subr.bf16.mxu1 %v2441_v0 }
 0xf1e   :  { %2300 = vmatpush3.bf16.msra.mxu1 %v3150_v12 }
 0xf1f   :  { %2301 = vmatprep.subr.bf16.mxu1 %v2441_v0 }
 0xf22   :  { %2302 = vmatpush3.bf16.msra.mxu1 %v3154_v16 }
 0xf23   :  { %2303 = vmatprep.subr.bf16.mxu1 %v2441_v0 }
 0xf26   :  { %2304 = vmatpush3.bf16.msra.mxu1 %v3157_v19  ;;  %v1413_v19 = vld [vmem:[%s3331_s7 + $0x38] sm:$0xff]  ;;  %s2414_s7 = scalar_lea.vmem %s1508_s26, 32 }
 0xf27   :  { %p2415_p5 = scmp.ne.s32.totalorder %s1508_s26, %s2414_s7  ;;  %p2420_p7 = scmp.lt.s32.totalorder %s2414_s7, %s2414_s7 }
 0xf29   :  { %p2421_p8 = por %p2420_p7, %p2419_p6 }
 0xf2b   :  { %p2422_p9 = pnand %p2421_p8, %p2415_p5 }
 0xfc9   :  { %v1312_v10 = vpop.f32.mrf.mxu1 }
 0xfca   :  { %v1318_v59 = vadd.f32 %v1312_v10, %v1181_v2 }
 0xfcb   :  { %v2267_v21 = vpop.f32.mrf.mxu1 }
 0xfcc   :  { %2387 = vtanh.f32 %v1318_v59 }
 0xfcd   :  { %v1315_v23 = vpop.f32.mrf.mxu1 }
 0xfcf   :  { %v2268_v24 = vpop.f32.mrf.mxu1 }
 0xfd9   :  { %v2388_v44 = vpop.eup %2387 }
 0xfda   :  { %v1320_v5 = vpack.c.bf16 %v2388_v44, %v2388_v44 }
 0xfdc   :  { %2286 = vmatmul.mubr.bf16.vlgmr.msra.gmra.mxu0 %v1320_v5 }
 0xfdd   :  { %2341 = vmatprep.mubr.msk.f32.mxu0 %vm2442_vm0, %v2441_v0  ;;  %2310 = vmatpush3.msra.mxu0 %v1421_v26 }
 0xfde   :  { %2311 = vmatprep.subr.mxu0 %v2441_v0 }
 0xfdf   :  { %2312 = vmatpush3.msra.mxu0 %v1420_v27 }
 0xfe0   :  { %2313 = vmatprep.subr.mxu0 %v2441_v0 }
 0xfe1   :  { %2314 = vmatpush3.msra.mxu0 %v1419_v29 }
 0xfe2   :  { %2315 = vmatprep.subr.mxu0 %v2441_v0 }
 0xfe3   :  { %2316 = vmatpush3.msra.mxu0 %v1418_v30 }
 0xfe4   :  { %2317 = vmatprep.subr.mxu0 %v2441_v0 }
 0xfe5   :  { %2318 = vmatpush3.msra.mxu0 %v1417_v33 }
 0xfe6   :  { %2319 = vmatprep.subr.mxu0 %v2441_v0 }
 0xfe7   :  { %2320 = vmatpush3.msra.mxu0 %v1416_v52 }
 0xfe8   :  { %2321 = vmatprep.subr.mxu0 %v2441_v0 }
 0xfe9   :  { %2322 = vmatpush3.msra.mxu0 %v1415_v53 }
 0xfea   :  { %2323 = vmatprep.subr.mxu0 %v2441_v0 }
 0xfeb   :  { %2324 = vmatpush3.msra.mxu0 %v1414_v17 }
 0xfec   :  { %2325 = vmatprep.subr.mxu0 %v2441_v0 }
 0xfed   :  { %2326 = vmatpush3.msra.mxu0 %v1413_v19 }
 0xfee   :  { %2327 = vmatprep.subr.mxu0 %v2441_v0 }
 0xfef   :  { %2328 = vmatpush3.msra.mxu0 %v1412_v32 }
 0xff0   :  { %2329 = vmatprep.subr.mxu0 %v2441_v0 }
 0xff1   :  { %2330 = vmatpush3.msra.mxu0 %v1411_v20 }
 0xff2   :  { %2331 = vmatprep.subr.mxu0 %v2441_v0 }
 0xff3   :  { %2332 = vmatpush3.msra.mxu0 %v1410_v34 }
 0xff4   :  { %2333 = vmatprep.subr.mxu0 %v2441_v0 }
 0xff5   :  { %2334 = vmatpush3.msra.mxu0 %v1409_v35 }
 0xff6   :  { %2335 = vmatprep.subr.mxu0 %v2441_v0 }
 0xff7   :  { %2336 = vmatpush3.msra.mxu0 %v1408_v36 }
 0xff8   :  { %2337 = vmatprep.subr.mxu0 %v2441_v0 }
 0xff9   :  { %2338 = vmatpush3.msra.mxu0 %v1407_v63 }
 0xffa   :  { %2339 = vmatprep.subr.mxu0 %v2441_v0 }
 0xffb   :  { %2340 = vmatpush3.msra.mxu0 %v1406_v37 }
0x109c   :  { %v1355_v54 = vpop.f32.mrf.mxu0 }
0x109d   :  { %v1361_v11 = vadd.f32 %v1355_v54, %v3211_v58 }
0x109e   :  { %v2287_v12 = vpop.f32.mrf.mxu0 }
0x109f   :  { %2389 = vtanh.f32 %v1361_v11 }
0x10a0   :  { %v1358_v14 = vpop.f32.mrf.mxu0 }
0x10a2   :  { %v2288_v15 = vpop.f32.mrf.mxu0 }
0x10ac   :  { %v2390_v60 = vpop.eup %2389 }
0x10ad   :  { %v1363_v16 = vpack.c.bf16 %v2390_v60, %v2390_v60 }
0x10af   :  { %2306 = vmatmul.mubr.bf16.vlgmr.msra.gmra.mxu1 %v1363_v16 }
0x116f   :  { %v1398_v38 = vpop.f32.mrf.mxu1 }
0x1170   :  { %v1404_v3 = vadd.f32 %v1398_v38, %v3214_v61 }
0x1171   :  { %v2307_v39 = vpop.f32.mrf.mxu1 }
0x1172   :  { %2391 = vtanh.f32 %v1404_v3 }
0x1173   :  { %v1401_v40 = vpop.f32.mrf.mxu1 }
0x1175   :  { %v2308_v41 = vpop.f32.mrf.mxu1 }
0x117f   :  { %v2392_v42 = vpop.eup %2391 }
0x1180   :  { %2342 = vmatmul.mubr.f32.vlgmr.msra.gmra.mxu0 %v2392_v42 }
0x1240   :  { %v1495_v62 = vpop.f32.mrf.mxu0 }
0x1241   :  { %v1496_v45 = vadd.f32 %v1535_v43, %v1495_v62 }
0x1242   :  { %v2343_v0 = vpop.f32.mrf.mxu0 }
0x1243   :  { %1500 = vst.msk [vmem:[#allocation5] sm:$0x3] %vm1499_vm4, %v1496_v45 }
0x1244   :  { %2425 = shalt.err (!%p2422_p9)
}
0x1245   :  { %1510 = dma.vmem_to_hbm [thread:$0]  %s1508_s26, 32, %s3333_s9, [#allocation4]  }
0x1246   :  { %2436 = dma.done.wait [#allocation4], 32  }
0x1247   :  { %2437 = vsyncadd [#allocation4], 4294967264 }
0x1248   :  { %1514 = vsyncpa [#allocation3], 1 }
0x1249   :  { %1515 = vsyncpa [#allocation4], 1 }

</bundles_post_ra>
